<compile_context>
chip_gen: v6e
topology: v6e:2x2x1
jax: 0.10.0
libtpu: 0.0.40
codegen_flags: <defaults>
</compile_context>

<pallas_src>
import functools

import jax
import jax.numpy as jnp
from jax import lax
from jax.experimental import pallas as pl
from jax.experimental.pallas import tpu as pltpu

# ---------------------------------------------------------------- config ----
BATCH = 256            # driver batch (BN stats are over the whole batch)
NUM_STATES = 16        # num_of_states
HIDDEN = 32            # cfg.hidden_dim
NUM_HIDDEN_LAYERS = 2  # cfg.num_hidden_layers
BN_EPS = 1e-5

# weight-slab layout [NUM_W_SLOTS, H, H]:
#   slot 0            : FC1 weight (stored transposed, rows >= NUM_STATES zero)
#   slots 1..L        : middle-layer weights (transposed)
#   slot L+1          : FC_mu weight packed into column 0, rest zero
NUM_W_SLOTS = NUM_HIDDEN_LAYERS + 2
# vector-slab rows [NUM_VEC_ROWS, H]:
#   0: gamma1, 1: beta1, 2+2l / 3+2l: gamma/beta of middle layer l,
#   2+2L: FC_mu bias broadcast row; zero-padded to a sublane multiple.
_VEC_ROWS_RAW = 3 + 2 * NUM_HIDDEN_LAYERS
NUM_VEC_ROWS = ((_VEC_ROWS_RAW + 7) // 8) * 8


# ---------------------------------------------------------------- kernel ----
def iql_actor_kernel(obs_ref, wpack_ref, vec_ref, out_ref, *,
                     num_hidden_layers, batch, padded_batch, mm_dtype):
    vp = vec_ref[...]                                   # [NUM_VEC_ROWS, H] f32

    if padded_batch != batch:   # static: mask only emitted for ragged batches
        rows = lax.broadcasted_iota(jnp.int32, (padded_batch, HIDDEN), 0)
        mask = rows < batch
    else:
        mask = None
    inv_n = 1.0 / batch

    def bn_relu(x, gamma, beta):
        """Training-mode BatchNorm1d + ReLU with the affine folded.

        Two-pass stats (mean, then centered squares); padded rows are masked
        out of the statistics.  rsqrt/scale math runs on the [1, H] row so the
        [B, H] tensor only sees mul + add + max.
        """
        xm = x if mask is None else jnp.where(mask, x, 0.0)
        mean = jnp.sum(xm, axis=0, keepdims=True) * inv_n
        xc = x - mean
        xcm = xc if mask is None else jnp.where(mask, xc, 0.0)
        var = jnp.sum(xcm * xcm, axis=0, keepdims=True) * inv_n
        scale = gamma * lax.rsqrt(var + BN_EPS)          # [1, H] row math
        return jnp.maximum(xc * scale + beta, 0.0)

    # FC1 (bias dropped: cancels in x - mean) -> BN1 -> ReLU.
    x = jnp.dot(obs_ref[...], wpack_ref[0], preferred_element_type=jnp.float32)
    x = bn_relu(x, vp[0:1, :], vp[1:2, :])

    # Middle layers (static unroll): Linear (no bias) -> BN -> ReLU.
    for l in range(num_hidden_layers):
        h = jnp.dot(x.astype(mm_dtype), wpack_ref[1 + l],
                    preferred_element_type=jnp.float32)
        x = bn_relu(h, vp[2 + 2 * l:3 + 2 * l, :], vp[3 + 2 * l:4 + 2 * l, :])

    # FC_mu head on the MXU: weight lives in column 0 of the last slab slot.
    mu_full = jnp.dot(x.astype(mm_dtype), wpack_ref[1 + num_hidden_layers],
                      preferred_element_type=jnp.float32)      # [B, H]
    bmu = vp[2 + 2 * num_hidden_layers:3 + 2 * num_hidden_layers, 0:1]  # [1,1]
    out_ref[...] = jnp.maximum(mu_full[:, 0:1] + bmu, 0.0)


# --------------------------------------------------------------- wrapper ----
def iql_forward(obs, wpack, vecpack, *, matmul_dtype=jnp.float32):
    """obs: [B, NUM_STATES] f32 -> actions: [B, 1] f32 (== IQL.forward)."""
    batch, s = obs.shape
    assert s == NUM_STATES and batch >= 2            # BN needs > 1 sample
    padded_batch = max(8, ((batch + 7) // 8) * 8)    # sublane-align rows

    # Host-side packing: pad obs to [padded_B, HIDDEN] so all matmuls are
    # uniform [B,32]x[32,32]; cast matmul operands only (bf16 on v6e/v7x
    # halves DMA bytes & doubles MXU rate; BN params/epilogue stay f32).
    obs_p = jnp.zeros((padded_batch, HIDDEN), matmul_dtype)
    obs_p = obs_p.at[:batch, :NUM_STATES].set(obs.astype(matmul_dtype))
    wpack_m = wpack.astype(matmul_dtype)

    kernel = functools.partial(
        iql_actor_kernel, num_hidden_layers=NUM_HIDDEN_LAYERS,
        batch=batch, padded_batch=padded_batch, mm_dtype=matmul_dtype)

    vmem = pl.BlockSpec(memory_space=pltpu.MemorySpace.VMEM)
    itemsize = jnp.dtype(matmul_dtype).itemsize
    flops = 2 * padded_batch * HIDDEN * HIDDEN * (2 + NUM_HIDDEN_LAYERS)
    bytes_accessed = (obs_p.size * itemsize + wpack_m.size * itemsize
                      + vecpack.size * 4 + padded_batch * 4)

    # Whole batch is VMEM-resident (no batch tiling: BN stats are whole-batch).
    # Raise scoped VMEM only when needed; stay <= 64 MiB for v7x.
    act_bytes = padded_batch * HIDDEN * 4
    vmem_need = bytes_accessed + 8 * act_bytes
    compiler_params = None
    if vmem_need > 12 * 2**20:
        compiler_params = pltpu.CompilerParams(
            vmem_limit_bytes=int(min(2 * vmem_need, 64 * 2**20)))

    out = pl.pallas_call(
        kernel,
        out_shape=jax.ShapeDtypeStruct((padded_batch, 1), jnp.float32),
        in_specs=[vmem, vmem, vmem],
        out_specs=vmem,
        cost_estimate=pl.CostEstimate(
            flops=flops,
            transcendentals=(1 + NUM_HIDDEN_LAYERS) * HIDDEN,
            bytes_accessed=bytes_accessed),
        compiler_params=compiler_params,
    )(obs_p, wpack_m, vecpack)
    return out[:batch] if padded_batch != batch else out


# ------------------------------------------------------------ param init ----
def make_params(key):
    """Kaiming-normal(fan_in, relu) weights; BN gamma/beta and FC_mu bias drawn
    randomly (instead of PyTorch's 1/0/0 init) so every code path is exercised.
    """
    ks = jax.random.split(key, 16)

    def kaiming(k, fan_in, shape):
        return jax.random.normal(k, shape, jnp.float32) * (2.0 / fan_in) ** 0.5

    # FC1: torch weight [H, S] -> stored transposed [S, H], zero-padded to [H, H].
    w1 = kaiming(ks[0], NUM_STATES, (NUM_STATES, HIDDEN))
    w1_pad = jnp.zeros((HIDDEN, HIDDEN), jnp.float32).at[:NUM_STATES, :].set(w1)
    wm = [kaiming(ks[1 + l], HIDDEN, (HIDDEN, HIDDEN))
          for l in range(NUM_HIDDEN_LAYERS)]
    wmu = kaiming(ks[1 + NUM_HIDDEN_LAYERS], HIDDEN, (HIDDEN,))
    wmu_col = jnp.zeros((HIDDEN, HIDDEN), jnp.float32).at[:, 0].set(wmu)
    wpack = jnp.stack([w1_pad] + wm + [wmu_col], axis=0)       # [2+L, H, H]

    g1 = 1.0 + 0.1 * jax.random.normal(ks[8], (HIDDEN,), jnp.float32)
    be1 = 0.1 * jax.random.normal(ks[9], (HIDDEN,), jnp.float32)
    gm = 1.0 + 0.1 * jax.random.normal(ks[10], (NUM_HIDDEN_LAYERS, HIDDEN), jnp.float32)
    bem = 0.1 * jax.random.normal(ks[11], (NUM_HIDDEN_LAYERS, HIDDEN), jnp.float32)
    bmu = 0.1 * jax.random.normal(ks[12], (), jnp.float32)

    rows = [g1, be1]
    for l in range(NUM_HIDDEN_LAYERS):
        rows += [gm[l], bem[l]]
    rows += [jnp.full((HIDDEN,), bmu, jnp.float32)]
    while len(rows) < NUM_VEC_ROWS:
        rows.append(jnp.zeros((HIDDEN,), jnp.float32))
    vecpack = jnp.stack(rows, axis=0)                          # [NUM_VEC_ROWS, H]

    assert wpack.shape == (NUM_W_SLOTS, HIDDEN, HIDDEN)
    assert vecpack.shape == (NUM_VEC_ROWS, HIDDEN)
    return wpack, vecpack


# -------------------------------------------------------- pure-JAX check ----
def iql_forward_ref(obs, wpack, vecpack, *, matmul_dtype=jnp.float32):
    md = matmul_dtype

    def dot(a, b):
        return jnp.dot(a.astype(md), b.astype(md),
                       preferred_element_type=jnp.float32)

    def bn_relu(x, g, b):
        m = jnp.mean(x, axis=0, keepdims=True)
        v = jnp.mean((x - m) ** 2, axis=0, keepdims=True)
        return jnp.maximum((x - m) * lax.rsqrt(v + BN_EPS) * g + b, 0.0)

    x0 = jnp.pad(obs, ((0, 0), (0, HIDDEN - NUM_STATES)))
    x = bn_relu(dot(x0, wpack[0]), vecpack[0:1], vecpack[1:2])
    for l in range(NUM_HIDDEN_LAYERS):
        x = bn_relu(dot(x, wpack[1 + l]),
                    vecpack[2 + 2 * l:3 + 2 * l], vecpack[3 + 2 * l:4 + 2 * l])
    mu = dot(x, wpack[1 + NUM_HIDDEN_LAYERS])[:, 0:1] \
        + vecpack[2 + 2 * NUM_HIDDEN_LAYERS, 0]
    return jnp.maximum(mu, 0.0)


# --------------------------------------------------------------- driver -----
if __name__ == "__main__":
    key = jax.random.PRNGKey(0)
    k_obs, k_params = jax.random.split(key)

    wpack, vecpack = make_params(k_params)
    obs = jax.random.normal(k_obs, (BATCH, NUM_STATES), jnp.float32)

    # f32 matmul path (default; works on v5e/v6e/v7x).
    actions = iql_forward(obs, wpack, vecpack)
    jax.block_until_ready(actions)
    ref = iql_forward_ref(obs, wpack, vecpack)
    assert actions.shape == (BATCH, 1)
    assert jnp.allclose(actions, ref, atol=1e-3, rtol=1e-3), "f32 mismatch"

    # bf16 matmul-operand path (v6e/v7x perf option); checked against a
    # bf16-aware reference so the comparison isolates kernel correctness.
    actions_bf16 = iql_forward(obs, wpack, vecpack, matmul_dtype=jnp.bfloat16)
    jax.block_until_ready(actions_bf16)
    ref_bf16 = iql_forward_ref(obs, wpack, vecpack, matmul_dtype=jnp.bfloat16)
    assert jnp.allclose(actions_bf16, ref_bf16, atol=1e-2, rtol=1e-2), "bf16 mismatch"

    # Ragged batch (not a sublane multiple) exercises the masked-BN padding path.
    obs_small = obs[:12]
    actions_small = iql_forward(obs_small, wpack, vecpack)
    jax.block_until_ready(actions_small)
    ref_small = iql_forward_ref(obs_small, wpack, vecpack)
    assert actions_small.shape == (12, 1)
    assert jnp.allclose(actions_small, ref_small, atol=1e-3, rtol=1e-3), "ragged mismatch"

    print("KERNEL_OK")
</pallas_src>

<mosaic_0001>
module attributes {stable_mosaic.version = 11 : i64} {
  func.func @iql_actor_kernel(%arg0: memref<256x32xf32, #tpu.memory_space<vmem>>, %arg1: memref<4x32x32xf32, #tpu.memory_space<vmem>>, %arg2: memref<8x32xf32, #tpu.memory_space<vmem>>, %arg3: memref<256x1xf32, #tpu.memory_space<vmem>>) attributes {dimension_semantics = [], scalar_prefetch = 0 : i64, scratch_operands = 0 : i64, tpu.core_type = #tpu.core_type<tc>} {
    %c0 = arith.constant 0 : index
    %c0_0 = arith.constant 0 : index
    %0 = vector.load %arg2[%c0, %c0_0] : memref<8x32xf32, #tpu.memory_space<vmem>>, vector<8x32xf32>
    %c0_1 = arith.constant 0 : index
    %c0_2 = arith.constant 0 : index
    %1 = vector.load %arg0[%c0_1, %c0_2] : memref<256x32xf32, #tpu.memory_space<vmem>>, vector<256x32xf32>
    %c0_3 = arith.constant 0 : index
    %c0_4 = arith.constant 0 : index
    %c0_5 = arith.constant 0 : index
    %2 = vector.load %arg1[%c0_3, %c0_4, %c0_5] : memref<4x32x32xf32, #tpu.memory_space<vmem>>, vector<1x32x32xf32>
    %3 = vector.shape_cast %2 : vector<1x32x32xf32> to vector<32x32xf32>
    %cst = arith.constant dense<0.000000e+00> : vector<256x32xf32>
    %4 = tpu.matmul %1, %3, %cst {dimension_numbers = #tpu.dot_dimension_numbers<[1], [0], [0], [1], [0, 0, 1, 1], [], []>} : vector<256x32xf32>, vector<32x32xf32>, vector<256x32xf32> -> vector<256x32xf32>
    %5 = vector.extract_strided_slice %0 {offsets = [0, 0], sizes = [1, 32], strides = [1, 1]} : vector<8x32xf32> to vector<1x32xf32>
    %6 = vector.extract_strided_slice %0 {offsets = [1, 0], sizes = [1, 32], strides = [1, 1]} : vector<8x32xf32> to vector<1x32xf32>
    %cst_6 = arith.constant dense<0.000000e+00> : vector<32xf32>
    %7 = vector.multi_reduction <add>, %4, %cst_6 [0] : vector<256x32xf32> to vector<32xf32>
    %8 = vector.shape_cast %7 : vector<32xf32> to vector<1x32xf32>
    %cst_7 = arith.constant 3.906250e-03 : f32
    %9 = vector.broadcast %cst_7 : f32 to vector<1x32xf32>
    %10 = arith.mulf %8, %9 : vector<1x32xf32>
    %11 = vector.broadcast %10 : vector<1x32xf32> to vector<256x32xf32>
    %12 = arith.subf %4, %11 : vector<256x32xf32>
    %13 = arith.mulf %12, %12 : vector<256x32xf32>
    %cst_8 = arith.constant dense<0.000000e+00> : vector<32xf32>
    %14 = vector.multi_reduction <add>, %13, %cst_8 [0] : vector<256x32xf32> to vector<32xf32>
    %15 = vector.shape_cast %14 : vector<32xf32> to vector<1x32xf32>
    %cst_9 = arith.constant 3.906250e-03 : f32
    %16 = vector.broadcast %cst_9 : f32 to vector<1x32xf32>
    %17 = arith.mulf %15, %16 : vector<1x32xf32>
    %cst_10 = arith.constant 9.99999974E-6 : f32
    %18 = vector.broadcast %cst_10 : f32 to vector<1x32xf32>
    %19 = arith.addf %17, %18 : vector<1x32xf32>
    %20 = math.rsqrt %19 : vector<1x32xf32>
    %21 = arith.mulf %5, %20 : vector<1x32xf32>
    %22 = vector.broadcast %21 : vector<1x32xf32> to vector<256x32xf32>
    %23 = arith.mulf %12, %22 : vector<256x32xf32>
    %24 = vector.broadcast %6 : vector<1x32xf32> to vector<256x32xf32>
    %25 = arith.addf %23, %24 : vector<256x32xf32>
    %cst_11 = arith.constant 0.000000e+00 : f32
    %26 = vector.broadcast %cst_11 : f32 to vector<256x32xf32>
    %27 = arith.maximumf %25, %26 : vector<256x32xf32>
    %c1 = arith.constant 1 : index
    %c0_12 = arith.constant 0 : index
    %c0_13 = arith.constant 0 : index
    %28 = vector.load %arg1[%c1, %c0_12, %c0_13] : memref<4x32x32xf32, #tpu.memory_space<vmem>>, vector<1x32x32xf32>
    %29 = vector.shape_cast %28 : vector<1x32x32xf32> to vector<32x32xf32>
    %cst_14 = arith.constant dense<0.000000e+00> : vector<256x32xf32>
    %30 = tpu.matmul %27, %29, %cst_14 {dimension_numbers = #tpu.dot_dimension_numbers<[1], [0], [0], [1], [0, 0, 1, 1], [], []>} : vector<256x32xf32>, vector<32x32xf32>, vector<256x32xf32> -> vector<256x32xf32>
    %31 = vector.extract_strided_slice %0 {offsets = [2, 0], sizes = [1, 32], strides = [1, 1]} : vector<8x32xf32> to vector<1x32xf32>
    %32 = vector.extract_strided_slice %0 {offsets = [3, 0], sizes = [1, 32], strides = [1, 1]} : vector<8x32xf32> to vector<1x32xf32>
    %cst_15 = arith.constant dense<0.000000e+00> : vector<32xf32>
    %33 = vector.multi_reduction <add>, %30, %cst_15 [0] : vector<256x32xf32> to vector<32xf32>
    %34 = vector.shape_cast %33 : vector<32xf32> to vector<1x32xf32>
    %cst_16 = arith.constant 3.906250e-03 : f32
    %35 = vector.broadcast %cst_16 : f32 to vector<1x32xf32>
    %36 = arith.mulf %34, %35 : vector<1x32xf32>
    %37 = vector.broadcast %36 : vector<1x32xf32> to vector<256x32xf32>
    %38 = arith.subf %30, %37 : vector<256x32xf32>
    %39 = arith.mulf %38, %38 : vector<256x32xf32>
    %cst_17 = arith.constant dense<0.000000e+00> : vector<32xf32>
    %40 = vector.multi_reduction <add>, %39, %cst_17 [0] : vector<256x32xf32> to vector<32xf32>
    %41 = vector.shape_cast %40 : vector<32xf32> to vector<1x32xf32>
    %cst_18 = arith.constant 3.906250e-03 : f32
    %42 = vector.broadcast %cst_18 : f32 to vector<1x32xf32>
    %43 = arith.mulf %41, %42 : vector<1x32xf32>
    %cst_19 = arith.constant 9.99999974E-6 : f32
    %44 = vector.broadcast %cst_19 : f32 to vector<1x32xf32>
    %45 = arith.addf %43, %44 : vector<1x32xf32>
    %46 = math.rsqrt %45 : vector<1x32xf32>
    %47 = arith.mulf %31, %46 : vector<1x32xf32>
    %48 = vector.broadcast %47 : vector<1x32xf32> to vector<256x32xf32>
    %49 = arith.mulf %38, %48 : vector<256x32xf32>
    %50 = vector.broadcast %32 : vector<1x32xf32> to vector<256x32xf32>
    %51 = arith.addf %49, %50 : vector<256x32xf32>
    %cst_20 = arith.constant 0.000000e+00 : f32
    %52 = vector.broadcast %cst_20 : f32 to vector<256x32xf32>
    %53 = arith.maximumf %51, %52 : vector<256x32xf32>
    %c2 = arith.constant 2 : index
    %c0_21 = arith.constant 0 : index
    %c0_22 = arith.constant 0 : index
    %54 = vector.load %arg1[%c2, %c0_21, %c0_22] : memref<4x32x32xf32, #tpu.memory_space<vmem>>, vector<1x32x32xf32>
    %55 = vector.shape_cast %54 : vector<1x32x32xf32> to vector<32x32xf32>
    %cst_23 = arith.constant dense<0.000000e+00> : vector<256x32xf32>
    %56 = tpu.matmul %53, %55, %cst_23 {dimension_numbers = #tpu.dot_dimension_numbers<[1], [0], [0], [1], [0, 0, 1, 1], [], []>} : vector<256x32xf32>, vector<32x32xf32>, vector<256x32xf32> -> vector<256x32xf32>
    %57 = vector.extract_strided_slice %0 {offsets = [4, 0], sizes = [1, 32], strides = [1, 1]} : vector<8x32xf32> to vector<1x32xf32>
    %58 = vector.extract_strided_slice %0 {offsets = [5, 0], sizes = [1, 32], strides = [1, 1]} : vector<8x32xf32> to vector<1x32xf32>
    %cst_24 = arith.constant dense<0.000000e+00> : vector<32xf32>
    %59 = vector.multi_reduction <add>, %56, %cst_24 [0] : vector<256x32xf32> to vector<32xf32>
    %60 = vector.shape_cast %59 : vector<32xf32> to vector<1x32xf32>
    %cst_25 = arith.constant 3.906250e-03 : f32
    %61 = vector.broadcast %cst_25 : f32 to vector<1x32xf32>
    %62 = arith.mulf %60, %61 : vector<1x32xf32>
    %63 = vector.broadcast %62 : vector<1x32xf32> to vector<256x32xf32>
    %64 = arith.subf %56, %63 : vector<256x32xf32>
    %65 = arith.mulf %64, %64 : vector<256x32xf32>
    %cst_26 = arith.constant dense<0.000000e+00> : vector<32xf32>
    %66 = vector.multi_reduction <add>, %65, %cst_26 [0] : vector<256x32xf32> to vector<32xf32>
    %67 = vector.shape_cast %66 : vector<32xf32> to vector<1x32xf32>
    %cst_27 = arith.constant 3.906250e-03 : f32
    %68 = vector.broadcast %cst_27 : f32 to vector<1x32xf32>
    %69 = arith.mulf %67, %68 : vector<1x32xf32>
    %cst_28 = arith.constant 9.99999974E-6 : f32
    %70 = vector.broadcast %cst_28 : f32 to vector<1x32xf32>
    %71 = arith.addf %69, %70 : vector<1x32xf32>
    %72 = math.rsqrt %71 : vector<1x32xf32>
    %73 = arith.mulf %57, %72 : vector<1x32xf32>
    %74 = vector.broadcast %73 : vector<1x32xf32> to vector<256x32xf32>
    %75 = arith.mulf %64, %74 : vector<256x32xf32>
    %76 = vector.broadcast %58 : vector<1x32xf32> to vector<256x32xf32>
    %77 = arith.addf %75, %76 : vector<256x32xf32>
    %cst_29 = arith.constant 0.000000e+00 : f32
    %78 = vector.broadcast %cst_29 : f32 to vector<256x32xf32>
    %79 = arith.maximumf %77, %78 : vector<256x32xf32>
    %c3 = arith.constant 3 : index
    %c0_30 = arith.constant 0 : index
    %c0_31 = arith.constant 0 : index
    %80 = vector.load %arg1[%c3, %c0_30, %c0_31] : memref<4x32x32xf32, #tpu.memory_space<vmem>>, vector<1x32x32xf32>
    %81 = vector.shape_cast %80 : vector<1x32x32xf32> to vector<32x32xf32>
    %cst_32 = arith.constant dense<0.000000e+00> : vector<256x32xf32>
    %82 = tpu.matmul %79, %81, %cst_32 {dimension_numbers = #tpu.dot_dimension_numbers<[1], [0], [0], [1], [0, 0, 1, 1], [], []>} : vector<256x32xf32>, vector<32x32xf32>, vector<256x32xf32> -> vector<256x32xf32>
    %83 = vector.extract_strided_slice %0 {offsets = [6, 0], sizes = [1, 1], strides = [1, 1]} : vector<8x32xf32> to vector<1x1xf32>
    %84 = vector.extract_strided_slice %82 {offsets = [0, 0], sizes = [256, 1], strides = [1, 1]} : vector<256x32xf32> to vector<256x1xf32>
    %85 = vector.broadcast %83 : vector<1x1xf32> to vector<256x1xf32>
    %86 = arith.addf %84, %85 : vector<256x1xf32>
    %cst_33 = arith.constant 0.000000e+00 : f32
    %87 = vector.broadcast %cst_33 : f32 to vector<256x1xf32>
    %88 = arith.maximumf %86, %87 : vector<256x1xf32>
    %c0_34 = arith.constant 0 : index
    %c0_35 = arith.constant 0 : index
    %89 = vector.load %arg3[%c0_34, %c0_35] : memref<256x1xf32, #tpu.memory_space<vmem>>, vector<256x1xf32>
    tpu.vector_store %arg3[%c0_34, %c0_35], %88 {strides = array<i32>} : memref<256x1xf32, #tpu.memory_space<vmem>>, vector<256x1xf32>,
    return
  }
}

</mosaic_0001>

<bundles_post_ra>
// kernel: tpu_custom_call.1
= control target key start
LH: loop header
LB: loop body
LE: loop exit
PB: predicated region body
PF: predicated region fallthrough
CT: control target
= control target key end

     0   :  { %vm51_vm0 = vcmask 261120   ;;  %vm2352_vm1 = vcmask 7168   ;;  %s4746_s1 = inlined_call_operand.vmem [shape: f32[4,32,32], index: 1, kind: input, shape index: {}]   ;;  %s4747_s0 = inlined_call_operand.vmem [shape: f32[256,32], index: 0, kind: input, shape index: {}]   ;;  %s4748_s2 = inlined_call_operand.vmem [shape: f32[8,32], index: 2, kind: input, shape index: {}]   ;;  %s4749_s3 = inlined_call_operand.vmem [shape: f32[256,1], index: 3, kind: output, shape index: {}]  }
   0x1   :  { %v50_v0 = vld [vmem:[%s4746_s1 + $0x18] sm:$0xff]  ;;  %v49_v1 = vld [vmem:[%s4746_s1 + $0x10] sm:$0xff]  ;;  %v15_v2 = vld [vmem:[%s4747_s0] sm:$0xff] }
   0x2   :  { %2673 = vmatprep.subr.mxu0 %v50_v0  ;;  %v48_v3 = vld [vmem:[%s4746_s1 + $0x8] sm:$0xff]  ;;  %2681 = vmatprep.mubr.msk.f32.mxu0 %vm51_vm0, %v15_v2  ;;  %v47_v4 = vld [vmem:[%s4746_s1] sm:$0xff]  ;;  %v17_v6 = vld [vmem:[%s4747_s0 + $0x10] sm:$0xff] }
   0x3   :  { %2674 = vmatpush3.msra.mxu0 %v50_v0  ;;  %v16_v5 = vld [vmem:[%s4747_s0 + $0x8] sm:$0xff]  ;;  %v18_v7 = vld [vmem:[%s4747_s0 + $0x18] sm:$0xff]  ;;  %v19_v8 = vld [vmem:[%s4747_s0 + $0x20] sm:$0xff] }
   0x4   :  { %2675 = vmatprep.subr.mxu0 %v49_v1  ;;  %v20_v9 = vld [vmem:[%s4747_s0 + $0x28] sm:$0xff]  ;;  %v21_v10 = vld [vmem:[%s4747_s0 + $0x30] sm:$0xff]  ;;  %v22_v11 = vld [vmem:[%s4747_s0 + $0x38] sm:$0xff] }
   0x5   :  { %2676 = vmatpush3.msra.mxu0 %v49_v1  ;;  %v23_v12 = vld [vmem:[%s4747_s0 + $0x40] sm:$0xff]  ;;  %v24_v13 = vld [vmem:[%s4747_s0 + $0x48] sm:$0xff]  ;;  %v25_v14 = vld [vmem:[%s4747_s0 + $0x50] sm:$0xff] }
   0x6   :  { %2677 = vmatprep.subr.mxu0 %v48_v3  ;;  %v26_v15 = vld [vmem:[%s4747_s0 + $0x58] sm:$0xff]  ;;  %v27_v16 = vld [vmem:[%s4747_s0 + $0x60] sm:$0xff]  ;;  %v28_v17 = vld [vmem:[%s4747_s0 + $0x68] sm:$0xff] }
   0x7   :  { %2678 = vmatpush3.msra.mxu0 %v48_v3  ;;  %v29_v18 = vld [vmem:[%s4747_s0 + $0x70] sm:$0xff]  ;;  %v30_v19 = vld [vmem:[%s4747_s0 + $0x78] sm:$0xff]  ;;  %v31_v20 = vld [vmem:[%s4747_s0 + $0x80] sm:$0xff] }
   0x8   :  { %2679 = vmatprep.subr.mxu0 %v47_v4  ;;  %v32_v21 = vld [vmem:[%s4747_s0 + $0x88] sm:$0xff]  ;;  %v33_v22 = vld [vmem:[%s4747_s0 + $0x90] sm:$0xff]  ;;  %v34_v23 = vld [vmem:[%s4747_s0 + $0x98] sm:$0xff] }
   0x9   :  { %2680 = vmatpush3.msra.mxu0 %v47_v4  ;;  %v35_v24 = vld [vmem:[%s4747_s0 + $0xa0] sm:$0xff]  ;;  %v36_v25 = vld [vmem:[%s4747_s0 + $0xa8] sm:$0xff]  ;;  %v37_v26 = vld [vmem:[%s4747_s0 + $0xb0] sm:$0xff] }
   0xa   :  { %2682 = vmatmul.mubr.msk.f32.vlgmr.msra.gmra.mxu0 %vm51_vm0, %v16_v5  ;;  %v38_v27 = vld [vmem:[%s4747_s0 + $0xb8] sm:$0xff]  ;;  %v39_v28 = vld [vmem:[%s4747_s0 + $0xc0] sm:$0xff]  ;;  %v40_v29 = vld [vmem:[%s4747_s0 + $0xc8] sm:$0xff] }
   0xb   :  { %2684 = vmatprep.mubr.msk.f32.mxu0 %vm51_vm0, %v17_v6  ;;  %v41_v30 = vld [vmem:[%s4747_s0 + $0xd0] sm:$0xff]  ;;  %v42_v31 = vld [vmem:[%s4747_s0 + $0xd8] sm:$0xff]  ;;  %v43_v32 = vld [vmem:[%s4747_s0 + $0xe0] sm:$0xff] }
   0xc   :  { %v44_v33 = vld [vmem:[%s4747_s0 + $0xe8] sm:$0xff]  ;;  %v45_v34 = vld [vmem:[%s4747_s0 + $0xf0] sm:$0xff]  ;;  %v46_v35 = vld [vmem:[%s4747_s0 + $0xf8] sm:$0xff] }
   0xe   :  { %2685 = vmatmul.mubr.msk.f32.gmra.mxu0 %vm51_vm0, %v18_v7 }
   0xf   :  { %2687 = vmatprep.mubr.msk.f32.mxu0 %vm51_vm0, %v19_v8 }
  0x12   :  { %2688 = vmatmul.mubr.msk.f32.gmra.mxu0 %vm51_vm0, %v20_v9 }
  0x13   :  { %2690 = vmatprep.mubr.msk.f32.mxu0 %vm51_vm0, %v21_v10 }
  0x16   :  { %2691 = vmatmul.mubr.msk.f32.gmra.mxu0 %vm51_vm0, %v22_v11 }
  0x17   :  { %2693 = vmatprep.mubr.msk.f32.mxu0 %vm51_vm0, %v23_v12 }
  0x1a   :  { %2694 = vmatmul.mubr.msk.f32.gmra.mxu0 %vm51_vm0, %v24_v13 }
  0x1b   :  { %2696 = vmatprep.mubr.msk.f32.mxu0 %vm51_vm0, %v25_v14 }
  0x1e   :  { %2697 = vmatmul.mubr.msk.f32.gmra.mxu0 %vm51_vm0, %v26_v15 }
  0x1f   :  { %2699 = vmatprep.mubr.msk.f32.mxu0 %vm51_vm0, %v27_v16 }
  0x22   :  { %2700 = vmatmul.mubr.msk.f32.gmra.mxu0 %vm51_vm0, %v28_v17 }
  0x23   :  { %2702 = vmatprep.mubr.msk.f32.mxu0 %vm51_vm0, %v29_v18 }
  0x26   :  { %2703 = vmatmul.mubr.msk.f32.gmra.mxu0 %vm51_vm0, %v30_v19 }
  0x27   :  { %2705 = vmatprep.mubr.msk.f32.mxu0 %vm51_vm0, %v31_v20 }
  0x2a   :  { %2706 = vmatmul.mubr.msk.f32.gmra.mxu0 %vm51_vm0, %v32_v21 }
  0x2b   :  { %2708 = vmatprep.mubr.msk.f32.mxu0 %vm51_vm0, %v33_v22 }
  0x2e   :  { %2709 = vmatmul.mubr.msk.f32.gmra.mxu0 %vm51_vm0, %v34_v23 }
  0x2f   :  { %2711 = vmatprep.mubr.msk.f32.mxu0 %vm51_vm0, %v35_v24 }
  0x32   :  { %2712 = vmatmul.mubr.msk.f32.gmra.mxu0 %vm51_vm0, %v36_v25 }
  0x33   :  { %2714 = vmatprep.mubr.msk.f32.mxu0 %vm51_vm0, %v37_v26 }
  0x36   :  { %2715 = vmatmul.mubr.msk.f32.gmra.mxu0 %vm51_vm0, %v38_v27 }
  0x37   :  { %2717 = vmatprep.mubr.msk.f32.mxu0 %vm51_vm0, %v39_v28 }
  0x3a   :  { %2718 = vmatmul.mubr.msk.f32.gmra.mxu0 %vm51_vm0, %v40_v29 }
  0x3b   :  { %2720 = vmatprep.mubr.msk.f32.mxu0 %vm51_vm0, %v41_v30 }
  0x3e   :  { %2721 = vmatmul.mubr.msk.f32.gmra.mxu0 %vm51_vm0, %v42_v31 }
  0x3f   :  { %2723 = vmatprep.mubr.msk.f32.mxu0 %vm51_vm0, %v43_v32 }
  0x42   :  { %2724 = vmatmul.mubr.msk.f32.gmra.mxu0 %vm51_vm0, %v44_v33 }
  0x43   :  { %2726 = vmatprep.mubr.msk.f32.mxu0 %vm51_vm0, %v45_v34 }
  0x46   :  { %2727 = vmatmul.mubr.msk.f32.gmra.mxu0 %vm51_vm0, %v46_v35 }
  0xca   :  { %v3064_v36 = vpop.f32.mrf.mxu0 }
  0xcb   :  { %v374_v40 = vsel %vm51_vm0, %v3064_v36, 0.0 }
  0xcc   :  { %v3066_v37 = vpop.f32.mrf.mxu0 }
  0xcd   :  { %v373_v38 = vsel %vm51_vm0, %v3066_v37, 0.0 }
  0xce   :  { %v3070_v39 = vpop.f32.mrf.mxu0  ;;  %v375_v41 = vadd.f32 %v374_v40, %v373_v38 }
  0xcf   :  { %v378_v46 = vsel %vm51_vm0, %v3070_v39, 0.0 }
  0xd0   :  { %v3074_v42 = vpop.f32.mrf.mxu0 }
  0xd1   :  { %v376_v43 = vsel %vm51_vm0, %v3074_v42, 0.0 }
  0xd2   :  { %v377_v44 = vadd.f32 %v376_v43, %v375_v41  ;;  %v3078_v45 = vpop.f32.mrf.mxu0 }
  0xd3   :  { %v382_v52 = vsel %vm51_vm0, %v3078_v45, 0.0 }
  0xd4   :  { %v3082_v47 = vpop.f32.mrf.mxu0  ;;  %v379_v48 = vadd.f32 %v378_v46, %v377_v44 }
  0xd5   :  { %v380_v49 = vsel %vm51_vm0, %v3082_v47, 0.0 }
  0xd6   :  { %v381_v50 = vadd.f32 %v380_v49, %v379_v48  ;;  %v3086_v51 = vpop.f32.mrf.mxu0 }
  0xd7   :  { %v386_v58 = vsel %vm51_vm0, %v3086_v51, 0.0 }
  0xd8   :  { %v3090_v53 = vpop.f32.mrf.mxu0  ;;  %v383_v54 = vadd.f32 %v382_v52, %v381_v50 }
  0xd9   :  { %v384_v55 = vsel %vm51_vm0, %v3090_v53, 0.0 }
  0xda   :  { %v385_v56 = vadd.f32 %v384_v55, %v383_v54  ;;  %v3094_v57 = vpop.f32.mrf.mxu0 }
  0xdb   :  { %v390_v0 = vsel %vm51_vm0, %v3094_v57, 0.0 }
  0xdc   :  { %v3098_v59 = vpop.f32.mrf.mxu0  ;;  %v387_v60 = vadd.f32 %v386_v58, %v385_v56 }
  0xdd   :  { %v388_v61 = vsel %vm51_vm0, %v3098_v59, 0.0 }
  0xde   :  { %v389_v62 = vadd.f32 %v388_v61, %v387_v60  ;;  %v3102_v63 = vpop.f32.mrf.mxu0 }
  0xdf   :  { %v394_v6 = vsel %vm51_vm0, %v3102_v63, 0.0 }
  0xe0   :  { %v3106_v1 = vpop.f32.mrf.mxu0  ;;  %v391_v2 = vadd.f32 %v390_v0, %v389_v62 }
  0xe1   :  { %v392_v3 = vsel %vm51_vm0, %v3106_v1, 0.0 }
  0xe2   :  { %v393_v4 = vadd.f32 %v392_v3, %v391_v2  ;;  %v3110_v5 = vpop.f32.mrf.mxu0 }
  0xe3   :  { %v398_v12 = vsel %vm51_vm0, %v3110_v5, 0.0 }
  0xe4   :  { %v3114_v7 = vpop.f32.mrf.mxu0  ;;  %v395_v8 = vadd.f32 %v394_v6, %v393_v4 }
  0xe5   :  { %v396_v9 = vsel %vm51_vm0, %v3114_v7, 0.0 }
  0xe6   :  { %v397_v10 = vadd.f32 %v396_v9, %v395_v8  ;;  %v3118_v11 = vpop.f32.mrf.mxu0 }
  0xe7   :  { %v402_v18 = vsel %vm51_vm0, %v3118_v11, 0.0 }
  0xe8   :  { %v3122_v13 = vpop.f32.mrf.mxu0  ;;  %v399_v14 = vadd.f32 %v398_v12, %v397_v10 }
  0xe9   :  { %v400_v15 = vsel %vm51_vm0, %v3122_v13, 0.0 }
  0xea   :  { %v401_v16 = vadd.f32 %v400_v15, %v399_v14  ;;  %v3126_v17 = vpop.f32.mrf.mxu0 }
  0xeb   :  { %v406_v24 = vsel %vm51_vm0, %v3126_v17, 0.0 }
  0xec   :  { %v3130_v19 = vpop.f32.mrf.mxu0  ;;  %v403_v20 = vadd.f32 %v402_v18, %v401_v16 }
  0xed   :  { %v404_v21 = vsel %vm51_vm0, %v3130_v19, 0.0 }
  0xee   :  { %v405_v22 = vadd.f32 %v404_v21, %v403_v20  ;;  %v3134_v23 = vpop.f32.mrf.mxu0 }
  0xef   :  { %v410_v30 = vsel %vm51_vm0, %v3134_v23, 0.0 }
  0xf0   :  { %v3138_v25 = vpop.f32.mrf.mxu0  ;;  %v407_v26 = vadd.f32 %v406_v24, %v405_v22 }
  0xf1   :  { %v408_v27 = vsel %vm51_vm0, %v3138_v25, 0.0 }
  0xf2   :  { %v409_v28 = vadd.f32 %v408_v27, %v407_v26  ;;  %v3142_v29 = vpop.f32.mrf.mxu0 }
  0xf3   :  { %v414_v38 = vsel %vm51_vm0, %v3142_v29, 0.0 }
  0xf4   :  { %v3146_v31 = vpop.f32.mrf.mxu0  ;;  %v411_v32 = vadd.f32 %v410_v30, %v409_v28  ;;  %v2424_v30 = vld [vmem:[%s4746_s1 + $0x38] sm:$0xff] }
  0xf5   :  { %v412_v33 = vsel %vm51_vm0, %v3146_v31, 0.0  ;;  %2729 = vmatprep.subr.mxu1 %v2424_v30 }
  0xf6   :  { %v413_v34 = vadd.f32 %v412_v33, %v411_v32  ;;  %v3150_v35 = vpop.f32.mrf.mxu0  ;;  %2730 = vmatpush3.msra.mxu1 %v2424_v30  ;;  %v2423_v33 = vld [vmem:[%s4746_s1 + $0x30] sm:$0xff] }
  0xf7   :  { %v418_v48 = vsel %vm51_vm0, %v3150_v35, 0.0  ;;  %2731 = vmatprep.subr.mxu1 %v2423_v33 }
  0xf8   :  { %v3154_v40 = vpop.f32.mrf.mxu0  ;;  %v415_v41 = vadd.f32 %v414_v38, %v413_v34  ;;  %2732 = vmatpush3.msra.mxu1 %v2423_v33  ;;  %v2422_v34 = vld [vmem:[%s4746_s1 + $0x28] sm:$0xff] }
  0xf9   :  { %v416_v43 = vsel %vm51_vm0, %v3154_v40, 0.0  ;;  %2733 = vmatprep.subr.mxu1 %v2422_v34 }
  0xfa   :  { %v417_v44 = vadd.f32 %v416_v43, %v415_v41  ;;  %v3158_v46 = vpop.f32.mrf.mxu0  ;;  %2734 = vmatpush3.msra.mxu1 %v2422_v34  ;;  %v2421_v43 = vld [vmem:[%s4746_s1 + $0x20] sm:$0xff] }
  0xfb   :  { %v422_v56 = vsel %vm51_vm0, %v3158_v46, 0.0  ;;  %2735 = vmatprep.subr.mxu1 %v2421_v43 }
  0xfc   :  { %v3162_v49 = vpop.f32.mrf.mxu0  ;;  %v419_v50 = vadd.f32 %v418_v48, %v417_v44  ;;  %2736 = vmatpush3.msra.mxu1 %v2421_v43 }
  0xfd   :  { %v420_v52 = vsel %vm51_vm0, %v3162_v49, 0.0 }
  0xfe   :  { %v421_v54 = vadd.f32 %v420_v52, %v419_v50  ;;  %v3166_v55 = vpop.f32.mrf.mxu0 }
  0xff   :  { %v426_v2 = vsel %vm51_vm0, %v3166_v55, 0.0 }
 0x100   :  { %v3170_v58 = vpop.f32.mrf.mxu0  ;;  %v423_v60 = vadd.f32 %v422_v56, %v421_v54 }
 0x101   :  { %v424_v61 = vsel %vm51_vm0, %v3170_v58, 0.0 }
 0x102   :  { %v425_v62 = vadd.f32 %v424_v61, %v423_v60  ;;  %v3174_v0 = vpop.f32.mrf.mxu0 }
 0x103   :  { %v430_v10 = vsel %vm51_vm0, %v3174_v0, 0.0 }
 0x104   :  { %v3178_v3 = vpop.f32.mrf.mxu0  ;;  %v427_v4 = vadd.f32 %v426_v2, %v425_v62 }
 0x105   :  { %v428_v6 = vsel %vm51_vm0, %v3178_v3, 0.0 }
 0x106   :  { %v429_v8 = vadd.f32 %v428_v6, %v427_v4  ;;  %v3182_v9 = vpop.f32.mrf.mxu0 }
 0x107   :  { %v434_v18 = vsel %vm51_vm0, %v3182_v9, 0.0 }
 0x108   :  { %v3186_v12 = vpop.f32.mrf.mxu0  ;;  %v431_v14 = vadd.f32 %v430_v10, %v429_v8 }
 0x109   :  { %v432_v15 = vsel %vm51_vm0, %v3186_v12, 0.0 }
 0x10a   :  { %v433_v16 = vadd.f32 %v432_v15, %v431_v14 }
 0x10c   :  { %v435_v20 = vadd.f32 %v434_v18, %v433_v16 }
 0x10e   :  { %v436_v21 = vrot.slane %v435_v20, 4 }
 0x110   :  { %v437_v22 = vadd.f32 %v436_v21, %v435_v20 }
 0x112   :  { %v438_v24 = vrot.slane %v437_v22, 2 }
 0x114   :  { %v439_v26 = vadd.f32 %v438_v24, %v437_v22 }
 0x116   :  { %v440_v27 = vrot.slane %v439_v26, 1 }
 0x118   :  { %v441_v28 = vadd.f32 %v440_v27, %v439_v26 }
 0x11a   :  { %v3195_v32 = vmul.f32 0.00390625, %v441_v28 }
 0x11c   :  { %v3205_v38 = vsub.f32 %v3066_v37, %v3195_v32  ;;  %v3209_v41 = vsub.f32 %v3064_v36, %v3195_v32  ;;  %v3216_v44 = vsub.f32 %v3074_v42, %v3195_v32  ;;  %v3220_v48 = vsub.f32 %v3070_v39, %v3195_v32 }
 0x11d   :  { %v3228_v50 = vsub.f32 %v3082_v47, %v3195_v32  ;;  %v3234_v42 = vsub.f32 %v3078_v45, %v3195_v32  ;;  %v3242_v61 = vsub.f32 %v3090_v53, %v3195_v32  ;;  %v3249_v45 = vsub.f32 %v3086_v51, %v3195_v32 }
 0x11e   :  { %v475_v37 = vmul.f32 %v3205_v38, %v3205_v38  ;;  %v476_v36 = vmul.f32 %v3209_v41, %v3209_v41  ;;  %v477_v52 = vmul.f32 %v3216_v44, %v3216_v44  ;;  %v478_v39 = vmul.f32 %v3220_v48, %v3220_v48 }
 0x11f   :  { %v479_v47 = vmul.f32 %v3228_v50, %v3228_v50  ;;  %v480_v4 = vmul.f32 %v3234_v42, %v3234_v42  ;;  %v3256_v53 = vsub.f32 %v3098_v59, %v3195_v32  ;;  %v481_v10 = vmul.f32 %v3242_v61, %v3242_v61 }
 0x120   :  { %v507_v54 = vsel %vm51_vm0, %v475_v37, 0.0  ;;  %v508_v56 = vsel %vm51_vm0, %v476_v36, 0.0  ;;  %v510_v62 = vsel %vm51_vm0, %v477_v52, 0.0  ;;  %v512_v6 = vsel %vm51_vm0, %v478_v39, 0.0 }
 0x121   :  { %v509_v60 = vadd.f32 %v508_v56, %v507_v54  ;;  %v514_v14 = vsel %vm51_vm0, %v479_v47, 0.0  ;;  %v3263_v51 = vsub.f32 %v3094_v57, %v3195_v32  ;;  %v482_v16 = vmul.f32 %v3249_v45, %v3249_v45 }
 0x122   :  { %v516_v18 = vsel %vm51_vm0, %v480_v4, 0.0  ;;  %v3270_v59 = vsub.f32 %v3106_v1, %v3195_v32  ;;  %v483_v21 = vmul.f32 %v3256_v53, %v3256_v53  ;;  %v518_v22 = vsel %vm51_vm0, %v481_v10, 0.0 }
 0x123   :  { %v511_v2 = vadd.f32 %v510_v62, %v509_v60  ;;  %v3277_v57 = vsub.f32 %v3102_v63, %v3195_v32  ;;  %v484_v26 = vmul.f32 %v3263_v51, %v3263_v51  ;;  %v520_v27 = vsel %vm51_vm0, %v482_v16, 0.0 }
 0x124   :  { %v3284_v1 = vsub.f32 %v3114_v7, %v3195_v32  ;;  %v485_v30 = vmul.f32 %v3270_v59, %v3270_v59  ;;  %v522_v33 = vsel %vm51_vm0, %v483_v21, 0.0  ;;  %v3291_v63 = vsub.f32 %v3110_v5, %v3195_v32 }
 0x125   :  { %v513_v8 = vadd.f32 %v512_v6, %v511_v2  ;;  %v486_v43 = vmul.f32 %v3277_v57, %v3277_v57  ;;  %v524_v37 = vsel %vm51_vm0, %v484_v26, 0.0  ;;  %v3298_v7 = vsub.f32 %v3122_v13, %v3195_v32 }
 0x126   :  { %v487_v52 = vmul.f32 %v3284_v1, %v3284_v1  ;;  %v526_v39 = vsel %vm51_vm0, %v485_v30, 0.0  ;;  %v3305_v5 = vsub.f32 %v3118_v11, %v3195_v32  ;;  %v488_v56 = vmul.f32 %v3291_v63, %v3291_v63 }
 0x127   :  { %v515_v15 = vadd.f32 %v514_v14, %v513_v8  ;;  %v528_v60 = vsel %vm51_vm0, %v486_v43, 0.0  ;;  %v3312_v13 = vsub.f32 %v3130_v19, %v3195_v32  ;;  %v489_v62 = vmul.f32 %v3298_v7, %v3298_v7 }
 0x128   :  { %v530_v2 = vsel %vm51_vm0, %v487_v52, 0.0  ;;  %v3319_v11 = vsub.f32 %v3126_v17, %v3195_v32  ;;  %v490_v6 = vmul.f32 %v3305_v5, %v3305_v5  ;;  %v532_v8 = vsel %vm51_vm0, %v488_v56, 0.0 }
 0x129   :  { %v517_v20 = vadd.f32 %v516_v18, %v515_v15  ;;  %v3326_v19 = vsub.f32 %v3138_v25, %v3195_v32  ;;  %v491_v14 = vmul.f32 %v3312_v13, %v3312_v13  ;;  %v534_v15 = vsel %vm51_vm0, %v489_v62, 0.0 }
 0x12a   :  { %v3333_v17 = vsub.f32 %v3134_v23, %v3195_v32  ;;  %v492_v18 = vmul.f32 %v3319_v11, %v3319_v11  ;;  %v3340_v25 = vsub.f32 %v3146_v31, %v3195_v32  ;;  %v3347_v23 = vsub.f32 %v3142_v29, %v3195_v32 }
 0x12b   :  { %v519_v24 = vadd.f32 %v518_v22, %v517_v20  ;;  %v536_v20 = vsel %vm51_vm0, %v490_v6, 0.0  ;;  %v493_v22 = vmul.f32 %v3326_v19, %v3326_v19  ;;  %v3354_v31 = vsub.f32 %v3154_v40, %v3195_v32 }
 0x12c   :  { %v3361_v29 = vsub.f32 %v3150_v35, %v3195_v32  ;;  %v3368_v40 = vsub.f32 %v3162_v49, %v3195_v32  ;;  %v3375_v35 = vsub.f32 %v3158_v46, %v3195_v32  ;;  %v3382_v49 = vsub.f32 %v3170_v58, %v3195_v32 }
 0x12d   :  { %v521_v28 = vadd.f32 %v520_v27, %v519_v24  ;;  %v538_v24 = vsel %vm51_vm0, %v491_v14, 0.0  ;;  %v494_v27 = vmul.f32 %v3333_v17, %v3333_v17  ;;  %v3389_v46 = vsub.f32 %v3166_v55, %v3195_v32 }
 0x12e   :  { %v3396_v58 = vsub.f32 %v3178_v3, %v3195_v32  ;;  %v3403_v55 = vsub.f32 %v3174_v0, %v3195_v32  ;;  %v3410_v3 = vsub.f32 %v3186_v12, %v3195_v32  ;;  %v3417_v0 = vsub.f32 %v3182_v9, %v3195_v32 }
 0x12f   :  { %v523_v34 = vadd.f32 %v522_v33, %v521_v28  ;;  %v540_v28 = vsel %vm51_vm0, %v492_v18, 0.0  ;;  %v495_v33 = vmul.f32 %v3340_v25, %v3340_v25 }
 0x130   :  { %v505_v12 = vmul.f32 %v3410_v3, %v3410_v3 }
 0x131   :  { %v525_v36 = vadd.f32 %v524_v37, %v523_v34  ;;  %v542_v34 = vsel %vm51_vm0, %v493_v22, 0.0  ;;  %v496_v37 = vmul.f32 %v3347_v23, %v3347_v23 }
 0x132   :  { %v566_v9 = vsel %vm51_vm0, %v505_v12, 0.0 }
 0x133   :  { %v527_v54 = vadd.f32 %v526_v39, %v525_v36  ;;  %v544_v36 = vsel %vm51_vm0, %v494_v27, 0.0  ;;  %v497_v39 = vmul.f32 %v3354_v31, %v3354_v31 }
 0x135   :  { %v529_v47 = vadd.f32 %v528_v60, %v527_v54  ;;  %v546_v54 = vsel %vm51_vm0, %v495_v33, 0.0  ;;  %v498_v60 = vmul.f32 %v3361_v29, %v3361_v29 }
 0x137   :  { %v531_v4 = vadd.f32 %v530_v2, %v529_v47  ;;  %v548_v47 = vsel %vm51_vm0, %v496_v37, 0.0  ;;  %v499_v2 = vmul.f32 %v3368_v40, %v3368_v40  ;;  %v506_v37 = vmul.f32 %v3417_v0, %v3417_v0 }
 0x139   :  { %v533_v10 = vadd.f32 %v532_v8, %v531_v4  ;;  %v550_v4 = vsel %vm51_vm0, %v497_v39, 0.0  ;;  %v500_v8 = vmul.f32 %v3375_v35, %v3375_v35  ;;  %v568_v39 = vsel %vm51_vm0, %v506_v37, 0.0 }
 0x13b   :  { %v535_v16 = vadd.f32 %v534_v15, %v533_v10  ;;  %v552_v10 = vsel %vm51_vm0, %v498_v60, 0.0  ;;  %v501_v15 = vmul.f32 %v3382_v49, %v3382_v49 }
 0x13d   :  { %v537_v21 = vadd.f32 %v536_v20, %v535_v16  ;;  %v554_v16 = vsel %vm51_vm0, %v499_v2, 0.0  ;;  %v502_v20 = vmul.f32 %v3389_v46, %v3389_v46 }
 0x13f   :  { %v539_v26 = vadd.f32 %v538_v24, %v537_v21  ;;  %v556_v21 = vsel %vm51_vm0, %v500_v8, 0.0  ;;  %v503_v24 = vmul.f32 %v3396_v58, %v3396_v58 }
 0x141   :  { %v541_v30 = vadd.f32 %v540_v28, %v539_v26  ;;  %v558_v26 = vsel %vm51_vm0, %v501_v15, 0.0  ;;  %v504_v28 = vmul.f32 %v3403_v55, %v3403_v55 }
 0x143   :  { %v543_v43 = vadd.f32 %v542_v34, %v541_v30  ;;  %v560_v30 = vsel %vm51_vm0, %v502_v20, 0.0  ;;  %v562_v34 = vsel %vm51_vm0, %v503_v24, 0.0 }
 0x145   :  { %v545_v52 = vadd.f32 %v544_v36, %v543_v43  ;;  %v564_v36 = vsel %vm51_vm0, %v504_v28, 0.0 }
 0x147   :  { %v547_v56 = vadd.f32 %v546_v54, %v545_v52 }
 0x149   :  { %v549_v62 = vadd.f32 %v548_v47, %v547_v56 }
 0x14b   :  { %v551_v6 = vadd.f32 %v550_v4, %v549_v62 }
 0x14d   :  { %v553_v14 = vadd.f32 %v552_v10, %v551_v6  ;;  %v580_v10 = vlaneseq }
 0x14f   :  { %v555_v18 = vadd.f32 %v554_v16, %v553_v14  ;;  %v3430_v14 = vshrl.u32 %v580_v10, 7  ;;  %v3435_v16 = vld [vmem:[%s4748_s2] sm:$0xff] }
 0x151   :  { %v557_v22 = vadd.f32 %v556_v21, %v555_v18  ;;  %v582_v20 = vsub.s32 0, %v3430_v14 }
 0x153   :  { %v559_v27 = vadd.f32 %v558_v26, %v557_v22  ;;  %v618_v22 = vsub.s32 1, %v3430_v14 }
 0x155   :  { %v561_v33 = vadd.f32 %v560_v30, %v559_v27  ;;  %v3443_v24 = vrot.slane %v3435_v16, %v618_v22 }
 0x157   :  { %v563_v43 = vadd.f32 %v562_v34, %v561_v33 }
 0x159   :  { %v565_v52 = vadd.f32 %v564_v36, %v563_v43 }
 0x15b   :  { %v567_v32 = vadd.f32 %v566_v9, %v565_v52 }
 0x15d   :  { %v569_v54 = vadd.f32 %v568_v39, %v567_v32 }
 0x15f   :  { %v570_v56 = vrot.slane %v569_v54, 4 }
 0x161   :  { %v571_v60 = vadd.f32 %v570_v56, %v569_v54 }
 0x163   :  { %v572_v47 = vrot.slane %v571_v60, 2 }
 0x165   :  { %v573_v62 = vadd.f32 %v572_v47, %v571_v60 }
 0x167   :  { %v574_v2 = vrot.slane %v573_v62, 1 }
 0x169   :  { %v575_v4 = vadd.f32 %v574_v2, %v573_v62 }
 0x16b   :  { %v576_v6 = vmul.f32 0.00390625, %v575_v4 }
 0x16d   :  { %v577_v8 = vadd.f32 1e-05, %v576_v6 }
 0x16f   :  { %2897 = vrsqrt.f32 %v577_v8 }
 0x17c   :  { %v2898_v15 = vpop.eup %2897 }
 0x17d   :  { %v579_v18 = vmul.f32 %v2898_v15, %v3435_v16 }
 0x17f   :  { %v3439_v21 = vrot.slane %v579_v18, %v582_v20 }
 0x181   :  { %v585_v26 = vmul.f32 %v3439_v21, %v3209_v41  ;;  %v584_v27 = vmul.f32 %v3439_v21, %v3205_v38  ;;  %v586_v28 = vmul.f32 %v3439_v21, %v3216_v44  ;;  %v587_v33 = vmul.f32 %v3439_v21, %v3220_v48 }
 0x182   :  { %v588_v12 = vmul.f32 %v3439_v21, %v3228_v50  ;;  %v589_v38 = vmul.f32 %v3439_v21, %v3234_v42  ;;  %v590_v44 = vmul.f32 %v3439_v21, %v3242_v61  ;;  %v591_v50 = vmul.f32 %v3439_v21, %v3249_v45 }
 0x183   :  { %v621_v30 = vadd.f32 %v3443_v24, %v585_v26  ;;  %v622_v34 = vadd.f32 %v3443_v24, %v586_v28  ;;  %v620_v43 = vadd.f32 %v3443_v24, %v584_v27  ;;  %v623_v36 = vadd.f32 %v3443_v24, %v587_v33 }
 0x184   :  { %v624_v52 = vadd.f32 %v3443_v24, %v588_v12  ;;  %v625_v9 = vadd.f32 %v3443_v24, %v589_v38  ;;  %v592_v32 = vmul.f32 %v3439_v21, %v3256_v53  ;;  %v626_v61 = vadd.f32 %v3443_v24, %v590_v44 }
 0x185   :  { %v653_v37 = vmax.f32 %v621_v30, 0.0  ;;  %v652_v41 = vmax.f32 %v620_v43, 0.0  ;;  %v654_v48 = vmax.f32 %v622_v34, 0.0  ;;  %v655_v42 = vmax.f32 %v623_v36, 0.0 }
 0x186   :  { %v656_v39 = vmax.f32 %v624_v52, 0.0  ;;  %v593_v54 = vmul.f32 %v3439_v21, %v3263_v51  ;;  %v627_v56 = vadd.f32 %v3443_v24, %v591_v50  ;;  %v657_v60 = vmax.f32 %v625_v9, 0.0 }
 0x187   :  { %2737 = vmatprep.mubr.msk.f32.mxu1 %vm51_vm0, %v652_v41  ;;  %v594_v45 = vmul.f32 %v3439_v21, %v3270_v59  ;;  %v628_v47 = vadd.f32 %v3443_v24, %v592_v32  ;;  %v658_v62 = vmax.f32 %v626_v61, 0.0  ;;  %v595_v53 = vmul.f32 %v3439_v21, %v3277_v57 }
 0x188   :  { %2738 = vmatmul.mubr.msk.f32.vlgmr.msra.gmra.mxu1 %vm51_vm0, %v653_v37  ;;  %v629_v2 = vadd.f32 %v3443_v24, %v593_v54  ;;  %v659_v4 = vmax.f32 %v627_v56, 0.0  ;;  %v596_v51 = vmul.f32 %v3439_v21, %v3284_v1  ;;  %v597_v59 = vmul.f32 %v3439_v21, %v3291_v63 }
 0x189   :  { %2740 = vmatprep.mubr.msk.f32.mxu1 %vm51_vm0, %v654_v48  ;;  %v630_v6 = vadd.f32 %v3443_v24, %v594_v45  ;;  %v660_v8 = vmax.f32 %v628_v47, 0.0  ;;  %v631_v10 = vadd.f32 %v3443_v24, %v595_v53  ;;  %v598_v57 = vmul.f32 %v3439_v21, %v3298_v7 }
 0x18a   :  { %v661_v15 = vmax.f32 %v629_v2, 0.0  ;;  %v632_v18 = vadd.f32 %v3443_v24, %v596_v51  ;;  %v599_v1 = vmul.f32 %v3439_v21, %v3305_v5  ;;  %v633_v22 = vadd.f32 %v3443_v24, %v597_v59 }
 0x18b   :  { %v662_v20 = vmax.f32 %v630_v6, 0.0  ;;  %v663_v26 = vmax.f32 %v631_v10, 0.0  ;;  %v600_v63 = vmul.f32 %v3439_v21, %v3312_v13  ;;  %v634_v27 = vadd.f32 %v3443_v24, %v598_v57 }
 0x18c   :  { %2741 = vmatmul.mubr.msk.f32.gmra.mxu1 %vm51_vm0, %v655_v42  ;;  %v664_v28 = vmax.f32 %v632_v18, 0.0  ;;  %v601_v7 = vmul.f32 %v3439_v21, %v3319_v11  ;;  %v635_v30 = vadd.f32 %v3443_v24, %v599_v1  ;;  %v665_v33 = vmax.f32 %v633_v22, 0.0 }
 0x18d   :  { %2743 = vmatprep.mubr.msk.f32.mxu1 %vm51_vm0, %v656_v39  ;;  %v602_v5 = vmul.f32 %v3439_v21, %v3326_v19  ;;  %v636_v12 = vadd.f32 %v3443_v24, %v600_v63  ;;  %v666_v34 = vmax.f32 %v634_v27, 0.0  ;;  %v603_v13 = vmul.f32 %v3439_v21, %v3333_v17 }
 0x18e   :  { %v637_v43 = vadd.f32 %v3443_v24, %v601_v7  ;;  %v667_v37 = vmax.f32 %v635_v30, 0.0  ;;  %v604_v11 = vmul.f32 %v3439_v21, %v3340_v25  ;;  %v605_v19 = vmul.f32 %v3439_v21, %v3347_v23 }
 0x18f   :  { %v638_v41 = vadd.f32 %v3443_v24, %v602_v5  ;;  %v668_v38 = vmax.f32 %v636_v12, 0.0  ;;  %v639_v36 = vadd.f32 %v3443_v24, %v603_v13  ;;  %v606_v17 = vmul.f32 %v3439_v21, %v3354_v31 }
 0x190   :  { %2744 = vmatmul.mubr.msk.f32.gmra.mxu1 %vm51_vm0, %v657_v60  ;;  %v669_v44 = vmax.f32 %v637_v43, 0.0  ;;  %v640_v52 = vadd.f32 %v3443_v24, %v604_v11  ;;  %v607_v25 = vmul.f32 %v3439_v21, %v3361_v29  ;;  %v641_v50 = vadd.f32 %v3443_v24, %v605_v19 }
 0x191   :  { %2746 = vmatprep.mubr.msk.f32.mxu1 %vm51_vm0, %v658_v62  ;;  %v670_v48 = vmax.f32 %v638_v41, 0.0  ;;  %v671_v9 = vmax.f32 %v639_v36, 0.0  ;;  %v608_v23 = vmul.f32 %v3439_v21, %v3368_v40  ;;  %v642_v42 = vadd.f32 %v3443_v24, %v606_v17 }
 0x192   :  { %v672_v32 = vmax.f32 %v640_v52, 0.0  ;;  %v609_v31 = vmul.f32 %v3439_v21, %v3375_v35  ;;  %v643_v61 = vadd.f32 %v3443_v24, %v607_v25  ;;  %v673_v39 = vmax.f32 %v641_v50, 0.0 }
 0x193   :  { %v610_v29 = vmul.f32 %v3439_v21, %v3382_v49  ;;  %v644_v54 = vadd.f32 %v3443_v24, %v608_v23  ;;  %v674_v56 = vmax.f32 %v642_v42, 0.0  ;;  %v611_v40 = vmul.f32 %v3439_v21, %v3389_v46 }
 0x194   :  { %2747 = vmatmul.mubr.msk.f32.gmra.mxu1 %vm51_vm0, %v659_v4  ;;  %v645_v60 = vadd.f32 %v3443_v24, %v609_v31  ;;  %v675_v45 = vmax.f32 %v643_v61, 0.0  ;;  %v612_v35 = vmul.f32 %v3439_v21, %v3396_v58  ;;  %v613_v49 = vmul.f32 %v3439_v21, %v3403_v55 }
 0x195   :  { %2749 = vmatprep.mubr.msk.f32.mxu1 %vm51_vm0, %v660_v8  ;;  %v646_v47 = vadd.f32 %v3443_v24, %v610_v29  ;;  %v676_v62 = vmax.f32 %v644_v54, 0.0  ;;  %v647_v53 = vadd.f32 %v3443_v24, %v611_v40  ;;  %v614_v46 = vmul.f32 %v3439_v21, %v3410_v3 }
 0x196   :  { %v677_v2 = vmax.f32 %v645_v60, 0.0  ;;  %v648_v4 = vadd.f32 %v3443_v24, %v612_v35  ;;  %v615_v58 = vmul.f32 %v3439_v21, %v3417_v0  ;;  %v649_v6 = vadd.f32 %v3443_v24, %v613_v49 }
 0x197   :  { %v678_v51 = vmax.f32 %v646_v47, 0.0  ;;  %v679_v8 = vmax.f32 %v647_v53, 0.0  ;;  %v650_v55 = vadd.f32 %v3443_v24, %v614_v46 }
 0x198   :  { %2750 = vmatmul.mubr.msk.f32.gmra.mxu1 %vm51_vm0, %v661_v15  ;;  %v680_v59 = vmax.f32 %v648_v4, 0.0  ;;  %v651_v3 = vadd.f32 %v3443_v24, %v615_v58  ;;  %v681_v10 = vmax.f32 %v649_v6, 0.0 }
 0x199   :  { %2752 = vmatprep.mubr.msk.f32.mxu1 %vm51_vm0, %v662_v20  ;;  %v682_v15 = vmax.f32 %v650_v55, 0.0 }
 0x19a   :  { %v683_v57 = vmax.f32 %v651_v3, 0.0 }
 0x19c   :  { %2753 = vmatmul.mubr.msk.f32.gmra.mxu1 %vm51_vm0, %v663_v26 }
 0x19d   :  { %2755 = vmatprep.mubr.msk.f32.mxu1 %vm51_vm0, %v664_v28 }
 0x1a0   :  { %2756 = vmatmul.mubr.msk.f32.gmra.mxu1 %vm51_vm0, %v665_v33 }
 0x1a1   :  { %2758 = vmatprep.mubr.msk.f32.mxu1 %vm51_vm0, %v666_v34 }
 0x1a4   :  { %2759 = vmatmul.mubr.msk.f32.gmra.mxu1 %vm51_vm0, %v667_v37 }
 0x1a5   :  { %2761 = vmatprep.mubr.msk.f32.mxu1 %vm51_vm0, %v668_v38 }
 0x1a8   :  { %2762 = vmatmul.mubr.msk.f32.gmra.mxu1 %vm51_vm0, %v669_v44 }
 0x1a9   :  { %2764 = vmatprep.mubr.msk.f32.mxu1 %vm51_vm0, %v670_v48 }
 0x1ac   :  { %2765 = vmatmul.mubr.msk.f32.gmra.mxu1 %vm51_vm0, %v671_v9 }
 0x1ad   :  { %2767 = vmatprep.mubr.msk.f32.mxu1 %vm51_vm0, %v672_v32 }
 0x1b0   :  { %2768 = vmatmul.mubr.msk.f32.gmra.mxu1 %vm51_vm0, %v673_v39 }
 0x1b1   :  { %2770 = vmatprep.mubr.msk.f32.mxu1 %vm51_vm0, %v674_v56 }
 0x1b4   :  { %2771 = vmatmul.mubr.msk.f32.gmra.mxu1 %vm51_vm0, %v675_v45 }
 0x1b5   :  { %2773 = vmatprep.mubr.msk.f32.mxu1 %vm51_vm0, %v676_v62 }
 0x1b8   :  { %2774 = vmatmul.mubr.msk.f32.gmra.mxu1 %vm51_vm0, %v677_v2 }
 0x1b9   :  { %2776 = vmatprep.mubr.msk.f32.mxu1 %vm51_vm0, %v678_v51 }
 0x1bc   :  { %2777 = vmatmul.mubr.msk.f32.gmra.mxu1 %vm51_vm0, %v679_v8 }
 0x1bd   :  { %2779 = vmatprep.mubr.msk.f32.mxu1 %vm51_vm0, %v680_v59 }
 0x1c0   :  { %2780 = vmatmul.mubr.msk.f32.gmra.mxu1 %vm51_vm0, %v681_v10 }
 0x1c1   :  { %2782 = vmatprep.mubr.msk.f32.mxu1 %vm51_vm0, %v682_v15 }
 0x1c4   :  { %2783 = vmatmul.mubr.msk.f32.gmra.mxu1 %vm51_vm0, %v683_v57 }
 0x248   :  { %v3573_v0 = vpop.f32.mrf.mxu1 }
 0x249   :  { %v1011_v24 = vsel %vm51_vm0, %v3573_v0, 0.0 }
 0x24a   :  { %v3575_v21 = vpop.f32.mrf.mxu1 }
 0x24b   :  { %v1010_v18 = vsel %vm51_vm0, %v3575_v21, 0.0 }
 0x24c   :  { %v3579_v20 = vpop.f32.mrf.mxu1  ;;  %v1012_v1 = vadd.f32 %v1011_v24, %v1010_v18 }
 0x24d   :  { %v1015_v28 = vsel %vm51_vm0, %v3579_v20, 0.0 }
 0x24e   :  { %v3583_v22 = vpop.f32.mrf.mxu1 }
 0x24f   :  { %v1013_v26 = vsel %vm51_vm0, %v3583_v22, 0.0 }
 0x250   :  { %v1014_v63 = vadd.f32 %v1013_v26, %v1012_v1  ;;  %v3587_v27 = vpop.f32.mrf.mxu1 }
 0x251   :  { %v1019_v34 = vsel %vm51_vm0, %v3587_v27, 0.0 }
 0x252   :  { %v3591_v7 = vpop.f32.mrf.mxu1  ;;  %v1016_v30 = vadd.f32 %v1015_v28, %v1014_v63 }
 0x253   :  { %v1017_v33 = vsel %vm51_vm0, %v3591_v7, 0.0 }
 0x254   :  { %v1018_v5 = vadd.f32 %v1017_v33, %v1016_v30  ;;  %v3595_v12 = vpop.f32.mrf.mxu1 }
 0x255   :  { %v1023_v38 = vsel %vm51_vm0, %v3595_v12, 0.0 }
 0x256   :  { %v3599_v13 = vpop.f32.mrf.mxu1  ;;  %v1020_v43 = vadd.f32 %v1019_v34, %v1018_v5 }
 0x257   :  { %v1021_v37 = vsel %vm51_vm0, %v3599_v13, 0.0 }
 0x258   :  { %v1022_v11 = vadd.f32 %v1021_v37, %v1020_v43  ;;  %v3603_v41 = vpop.f32.mrf.mxu1 }
 0x259   :  { %v1027_v48 = vsel %vm51_vm0, %v3603_v41, 0.0 }
 0x25a   :  { %v3607_v19 = vpop.f32.mrf.mxu1  ;;  %v1024_v36 = vadd.f32 %v1023_v38, %v1022_v11 }
 0x25b   :  { %v1025_v44 = vsel %vm51_vm0, %v3607_v19, 0.0 }
 0x25c   :  { %v1026_v17 = vadd.f32 %v1025_v44, %v1024_v36  ;;  %v3611_v52 = vpop.f32.mrf.mxu1 }
 0x25d   :  { %v1031_v32 = vsel %vm51_vm0, %v3611_v52, 0.0 }
 0x25e   :  { %v3615_v25 = vpop.f32.mrf.mxu1  ;;  %v1028_v50 = vadd.f32 %v1027_v48, %v1026_v17 }
 0x25f   :  { %v1029_v9 = vsel %vm51_vm0, %v3615_v25, 0.0 }
 0x260   :  { %v1030_v23 = vadd.f32 %v1029_v9, %v1028_v50  ;;  %v3619_v42 = vpop.f32.mrf.mxu1 }
 0x261   :  { %v1035_v56 = vsel %vm51_vm0, %v3619_v42, 0.0 }
 0x262   :  { %v3623_v31 = vpop.f32.mrf.mxu1  ;;  %v1032_v61 = vadd.f32 %v1031_v32, %v1030_v23 }
 0x263   :  { %v1033_v39 = vsel %vm51_vm0, %v3623_v31, 0.0 }
 0x264   :  { %v1034_v29 = vadd.f32 %v1033_v39, %v1032_v61  ;;  %v3627_v54 = vpop.f32.mrf.mxu1 }
 0x265   :  { %v1039_v62 = vsel %vm51_vm0, %v3627_v54, 0.0 }
 0x266   :  { %v3631_v40 = vpop.f32.mrf.mxu1  ;;  %v1036_v60 = vadd.f32 %v1035_v56, %v1034_v29 }
 0x267   :  { %v1037_v45 = vsel %vm51_vm0, %v3631_v40, 0.0 }
 0x268   :  { %v1038_v35 = vadd.f32 %v1037_v45, %v1036_v60  ;;  %v3635_v47 = vpop.f32.mrf.mxu1 }
 0x269   :  { %v1043_v51 = vsel %vm51_vm0, %v3635_v47, 0.0 }
 0x26a   :  { %v3639_v49 = vpop.f32.mrf.mxu1  ;;  %v1040_v53 = vadd.f32 %v1039_v62, %v1038_v35 }
 0x26b   :  { %v1041_v2 = vsel %vm51_vm0, %v3639_v49, 0.0 }
 0x26c   :  { %v1042_v46 = vadd.f32 %v1041_v2, %v1040_v53  ;;  %v3643_v4 = vpop.f32.mrf.mxu1 }
 0x26d   :  { %v1047_v3 = vsel %vm51_vm0, %v3643_v4, 0.0 }
 0x26e   :  { %v3647_v58 = vpop.f32.mrf.mxu1  ;;  %v1044_v6 = vadd.f32 %v1043_v51, %v1042_v46 }
 0x26f   :  { %v1045_v8 = vsel %vm51_vm0, %v3647_v58, 0.0 }
 0x270   :  { %v1046_v55 = vadd.f32 %v1045_v8, %v1044_v6  ;;  %v3651_v59 = vpop.f32.mrf.mxu1 }
 0x271   :  { %v1051_v1 = vsel %vm51_vm0, %v3651_v59, 0.0 }
 0x272   :  { %v3655_v10 = vpop.f32.mrf.mxu1  ;;  %v1048_v15 = vadd.f32 %v1047_v3, %v1046_v55 }
 0x273   :  { %v1049_v57 = vsel %vm51_vm0, %v3655_v10, 0.0 }
 0x274   :  { %v1050_v18 = vadd.f32 %v1049_v57, %v1048_v15  ;;  %v3659_v24 = vpop.f32.mrf.mxu1  ;;  %v2460_v57 = vld [vmem:[%s4746_s1 + $0x58] sm:$0xff] }
 0x275   :  { %v1055_v5 = vsel %vm51_vm0, %v3659_v24, 0.0  ;;  %2785 = vmatprep.subr.mxu0 %v2460_v57 }
 0x276   :  { %v3663_v26 = vpop.f32.mrf.mxu1  ;;  %v1052_v63 = vadd.f32 %v1051_v1, %v1050_v18  ;;  %2786 = vmatpush3.msra.mxu0 %v2460_v57  ;;  %v2459_v1 = vld [vmem:[%s4746_s1 + $0x50] sm:$0xff] }
 0x277   :  { %v1053_v28 = vsel %vm51_vm0, %v3663_v26, 0.0  ;;  %2787 = vmatprep.subr.mxu0 %v2459_v1 }
 0x278   :  { %v1054_v30 = vadd.f32 %v1053_v28, %v1052_v63  ;;  %v3667_v33 = vpop.f32.mrf.mxu1  ;;  %2788 = vmatpush3.msra.mxu0 %v2459_v1  ;;  %v2458_v63 = vld [vmem:[%s4746_s1 + $0x48] sm:$0xff] }
 0x279   :  { %v1059_v36 = vsel %vm51_vm0, %v3667_v33, 0.0  ;;  %2789 = vmatprep.subr.mxu0 %v2458_v63 }
 0x27a   :  { %v3671_v34 = vpop.f32.mrf.mxu1  ;;  %v1056_v43 = vadd.f32 %v1055_v5, %v1054_v30  ;;  %2790 = vmatpush3.msra.mxu0 %v2458_v63  ;;  %v2457_v5 = vld [vmem:[%s4746_s1 + $0x40] sm:$0xff] }
 0x27b   :  { %v1057_v37 = vsel %vm51_vm0, %v3671_v34, 0.0  ;;  %2791 = vmatprep.subr.mxu0 %v2457_v5 }
 0x27c   :  { %v1058_v11 = vadd.f32 %v1057_v37, %v1056_v43  ;;  %v3675_v38 = vpop.f32.mrf.mxu1  ;;  %2792 = vmatpush3.msra.mxu0 %v2457_v5 }
 0x27d   :  { %v1063_v23 = vsel %vm51_vm0, %v3675_v38, 0.0 }
 0x27e   :  { %v3679_v44 = vpop.f32.mrf.mxu1  ;;  %v1060_v17 = vadd.f32 %v1059_v36, %v1058_v11 }
 0x27f   :  { %v1061_v48 = vsel %vm51_vm0, %v3679_v44, 0.0 }
 0x280   :  { %v1062_v50 = vadd.f32 %v1061_v48, %v1060_v17  ;;  %v3683_v9 = vpop.f32.mrf.mxu1 }
 0x281   :  { %v1067_v60 = vsel %vm51_vm0, %v3683_v9, 0.0 }
 0x282   :  { %v3687_v32 = vpop.f32.mrf.mxu1  ;;  %v1064_v61 = vadd.f32 %v1063_v23, %v1062_v50 }
 0x283   :  { %v1065_v39 = vsel %vm51_vm0, %v3687_v32, 0.0 }
 0x284   :  { %v1066_v29 = vadd.f32 %v1065_v39, %v1064_v61  ;;  %v3691_v56 = vpop.f32.mrf.mxu1 }
 0x285   :  { %v1071_v2 = vsel %vm51_vm0, %v3691_v56, 0.0 }
 0x286   :  { %v3695_v45 = vpop.f32.mrf.mxu1  ;;  %v1068_v35 = vadd.f32 %v1067_v60, %v1066_v29 }
 0x287   :  { %v1069_v62 = vsel %vm51_vm0, %v3695_v45, 0.0 }
 0x288   :  { %v1070_v53 = vadd.f32 %v1069_v62, %v1068_v35 }
 0x28a   :  { %v1072_v46 = vadd.f32 %v1071_v2, %v1070_v53 }
 0x28c   :  { %v1073_v51 = vrot.slane %v1072_v46, 4 }
 0x28e   :  { %v1074_v6 = vadd.f32 %v1073_v51, %v1072_v46 }
 0x290   :  { %v1075_v8 = vrot.slane %v1074_v6, 2 }
 0x292   :  { %v1076_v55 = vadd.f32 %v1075_v8, %v1074_v6 }
 0x294   :  { %v1077_v3 = vrot.slane %v1076_v55, 1 }
 0x296   :  { %v1078_v15 = vadd.f32 %v1077_v3, %v1076_v55 }
 0x298   :  { %v3704_v18 = vmul.f32 0.00390625, %v1078_v15 }
 0x29a   :  { %v3714_v28 = vsub.f32 %v3575_v21, %v3704_v18  ;;  %v3718_v30 = vsub.f32 %v3573_v0, %v3704_v18  ;;  %v3725_v43 = vsub.f32 %v3583_v22, %v3704_v18  ;;  %v3729_v37 = vsub.f32 %v3579_v20, %v3704_v18 }
 0x29b   :  { %v3737_v11 = vsub.f32 %v3591_v7, %v3704_v18  ;;  %v3743_v22 = vsub.f32 %v3587_v27, %v3704_v18  ;;  %v3751_v23 = vsub.f32 %v3599_v13, %v3704_v18  ;;  %v3758_v27 = vsub.f32 %v3595_v12, %v3704_v18 }
 0x29c   :  { %v1112_v21 = vmul.f32 %v3714_v28, %v3714_v28  ;;  %v1113_v0 = vmul.f32 %v3718_v30, %v3718_v30  ;;  %v1114_v36 = vmul.f32 %v3725_v43, %v3725_v43  ;;  %v1115_v20 = vmul.f32 %v3729_v37, %v3729_v37 }
 0x29d   :  { %v1116_v7 = vmul.f32 %v3737_v11, %v3737_v11  ;;  %v1117_v29 = vmul.f32 %v3743_v22, %v3743_v22  ;;  %v3765_v13 = vsub.f32 %v3607_v19, %v3704_v18  ;;  %v1118_v62 = vmul.f32 %v3751_v23, %v3751_v23 }
 0x29e   :  { %v1144_v17 = vsel %vm51_vm0, %v1112_v21, 0.0  ;;  %v1145_v48 = vsel %vm51_vm0, %v1113_v0, 0.0  ;;  %v1147_v61 = vsel %vm51_vm0, %v1114_v36, 0.0  ;;  %v1149_v60 = vsel %vm51_vm0, %v1115_v20, 0.0 }
 0x29f   :  { %v1146_v50 = vadd.f32 %v1145_v48, %v1144_v17  ;;  %v1151_v53 = vsel %vm51_vm0, %v1116_v7, 0.0  ;;  %v3772_v12 = vsub.f32 %v3603_v41, %v3704_v18  ;;  %v1119_v46 = vmul.f32 %v3758_v27, %v3758_v27 }
 0x2a0   :  { %v1153_v51 = vsel %vm51_vm0, %v1117_v29, 0.0  ;;  %v3779_v19 = vsub.f32 %v3615_v25, %v3704_v18  ;;  %v1120_v8 = vmul.f32 %v3765_v13, %v3765_v13  ;;  %v1155_v55 = vsel %vm51_vm0, %v1118_v62, 0.0 }
 0x2a1   :  { %v1148_v39 = vadd.f32 %v1147_v61, %v1146_v50  ;;  %v3786_v41 = vsub.f32 %v3611_v52, %v3704_v18  ;;  %v1121_v15 = vmul.f32 %v3772_v12, %v3772_v12  ;;  %v1157_v57 = vsel %vm51_vm0, %v1119_v46, 0.0 }
 0x2a2   :  { %v3793_v25 = vsub.f32 %v3623_v31, %v3704_v18  ;;  %v1122_v63 = vmul.f32 %v3779_v19, %v3779_v19  ;;  %v1159_v5 = vsel %vm51_vm0, %v1120_v8, 0.0  ;;  %v3800_v52 = vsub.f32 %v3619_v42, %v3704_v18 }
 0x2a3   :  { %v1150_v35 = vadd.f32 %v1149_v60, %v1148_v39  ;;  %v1123_v0 = vmul.f32 %v3786_v41, %v3786_v41  ;;  %v1161_v36 = vsel %vm51_vm0, %v1121_v15, 0.0  ;;  %v3807_v31 = vsub.f32 %v3631_v40, %v3704_v18 }
 0x2a4   :  { %v1124_v17 = vmul.f32 %v3793_v25, %v3793_v25  ;;  %v1163_v48 = vsel %vm51_vm0, %v1122_v63, 0.0  ;;  %v3814_v42 = vsub.f32 %v3627_v54, %v3704_v18  ;;  %v1125_v7 = vmul.f32 %v3800_v52, %v3800_v52 }
 0x2a5   :  { %v1152_v2 = vadd.f32 %v1151_v53, %v1150_v35  ;;  %v1165_v61 = vsel %vm51_vm0, %v1123_v0, 0.0  ;;  %v3821_v40 = vsub.f32 %v3639_v49, %v3704_v18  ;;  %v1126_v29 = vmul.f32 %v3807_v31, %v3807_v31 }
 0x2a6   :  { %v1167_v60 = vsel %vm51_vm0, %v1124_v17, 0.0  ;;  %v3828_v54 = vsub.f32 %v3635_v47, %v3704_v18  ;;  %v1127_v62 = vmul.f32 %v3814_v42, %v3814_v42  ;;  %v1169_v53 = vsel %vm51_vm0, %v1125_v7, 0.0 }
 0x2a7   :  { %v1154_v6 = vadd.f32 %v1153_v51, %v1152_v2  ;;  %v3835_v49 = vsub.f32 %v3647_v58, %v3704_v18  ;;  %v1128_v46 = vmul.f32 %v3821_v40, %v3821_v40  ;;  %v1171_v51 = vsel %vm51_vm0, %v1126_v29, 0.0 }
 0x2a8   :  { %v3842_v47 = vsub.f32 %v3643_v4, %v3704_v18  ;;  %v1129_v8 = vmul.f32 %v3828_v54, %v3828_v54  ;;  %v3849_v58 = vsub.f32 %v3655_v10, %v3704_v18  ;;  %v3856_v4 = vsub.f32 %v3651_v59, %v3704_v18 }
 0x2a9   :  { %v1156_v3 = vadd.f32 %v1155_v55, %v1154_v6  ;;  %v1173_v55 = vsel %vm51_vm0, %v1127_v62, 0.0  ;;  %v1130_v15 = vmul.f32 %v3835_v49, %v3835_v49  ;;  %v3863_v10 = vsub.f32 %v3663_v26, %v3704_v18 }
 0x2aa   :  { %v1131_v63 = vmul.f32 %v3842_v47, %v3842_v47  ;;  %v1132_v0 = vmul.f32 %v3849_v58, %v3849_v58  ;;  %v3870_v59 = vsub.f32 %v3659_v24, %v3704_v18  ;;  %v1133_v17 = vmul.f32 %v3856_v4, %v3856_v4 }
 0x2ab   :  { %v1158_v1 = vadd.f32 %v1157_v57, %v1156_v3  ;;  %v1175_v57 = vsel %vm51_vm0, %v1128_v46, 0.0  ;;  %v3877_v26 = vsub.f32 %v3671_v34, %v3704_v18  ;;  %v1134_v7 = vmul.f32 %v3863_v10, %v3863_v10 }
 0x2ac   :  { %v3884_v24 = vsub.f32 %v3667_v33, %v3704_v18  ;;  %v1135_v29 = vmul.f32 %v3870_v59, %v3870_v59  ;;  %v3891_v34 = vsub.f32 %v3679_v44, %v3704_v18  ;;  %v3898_v33 = vsub.f32 %v3675_v38, %v3704_v18 }
 0x2ad   :  { %v1160_v21 = vadd.f32 %v1159_v5, %v1158_v1  ;;  %v1177_v5 = vsel %vm51_vm0, %v1129_v8, 0.0  ;;  %v1136_v62 = vmul.f32 %v3877_v26, %v3877_v26  ;;  %v3905_v44 = vsub.f32 %v3687_v32, %v3704_v18 }
 0x2ae   :  { %v1137_v46 = vmul.f32 %v3884_v24, %v3884_v24  ;;  %v1138_v8 = vmul.f32 %v3891_v34, %v3891_v34  ;;  %v3912_v38 = vsub.f32 %v3683_v9, %v3704_v18  ;;  %v3919_v32 = vsub.f32 %v3695_v45, %v3704_v18 }
 0x2af   :  { %v1162_v20 = vadd.f32 %v1161_v36, %v1160_v21  ;;  %v1179_v36 = vsel %vm51_vm0, %v1130_v15, 0.0  ;;  %v1139_v15 = vmul.f32 %v3898_v33, %v3898_v33  ;;  %v3926_v9 = vsub.f32 %v3691_v56, %v3704_v18 }
 0x2b0   :  { %v1142_v45 = vmul.f32 %v3919_v32, %v3919_v32 }
 0x2b1   :  { %v1164_v50 = vadd.f32 %v1163_v48, %v1162_v20  ;;  %v1181_v48 = vsel %vm51_vm0, %v1131_v63, 0.0  ;;  %v1140_v63 = vmul.f32 %v3905_v44, %v3905_v44 }
 0x2b2   :  { %v1203_v56 = vsel %vm51_vm0, %v1142_v45, 0.0 }
 0x2b3   :  { %v1166_v39 = vadd.f32 %v1165_v61, %v1164_v50  ;;  %v1183_v61 = vsel %vm51_vm0, %v1132_v0, 0.0  ;;  %v1141_v0 = vmul.f32 %v3912_v38, %v3912_v38 }
 0x2b5   :  { %v1168_v35 = vadd.f32 %v1167_v60, %v1166_v39  ;;  %v1185_v60 = vsel %vm51_vm0, %v1133_v17, 0.0  ;;  %v1199_v17 = vsel %vm51_vm0, %v1140_v63, 0.0 }
 0x2b7   :  { %v1170_v2 = vadd.f32 %v1169_v53, %v1168_v35  ;;  %v1187_v53 = vsel %vm51_vm0, %v1134_v7, 0.0  ;;  %v1201_v7 = vsel %vm51_vm0, %v1141_v0, 0.0 }
 0x2b9   :  { %v1172_v6 = vadd.f32 %v1171_v51, %v1170_v2  ;;  %v1189_v51 = vsel %vm51_vm0, %v1135_v29, 0.0 }
 0x2bb   :  { %v1174_v3 = vadd.f32 %v1173_v55, %v1172_v6  ;;  %v1191_v55 = vsel %vm51_vm0, %v1136_v62, 0.0 }
 0x2bd   :  { %v1176_v1 = vadd.f32 %v1175_v57, %v1174_v3  ;;  %v1193_v57 = vsel %vm51_vm0, %v1137_v46, 0.0 }
 0x2bf   :  { %v1178_v21 = vadd.f32 %v1177_v5, %v1176_v1  ;;  %v1195_v5 = vsel %vm51_vm0, %v1138_v8, 0.0 }
 0x2c1   :  { %v1180_v20 = vadd.f32 %v1179_v36, %v1178_v21  ;;  %v1197_v36 = vsel %vm51_vm0, %v1139_v15, 0.0  ;;  %v1255_v15 = vsub.s32 3, %v3430_v14 }
 0x2c3   :  { %v1182_v50 = vadd.f32 %v1181_v48, %v1180_v20 }
 0x2c5   :  { %v1184_v39 = vadd.f32 %v1183_v61, %v1182_v50  ;;  %v1143_v50 = vmul.f32 %v3926_v9, %v3926_v9 }
 0x2c7   :  { %v1186_v35 = vadd.f32 %v1185_v60, %v1184_v39  ;;  %v1205_v39 = vsel %vm51_vm0, %v1143_v50, 0.0 }
 0x2c9   :  { %v1188_v2 = vadd.f32 %v1187_v53, %v1186_v35 }
 0x2cb   :  { %v1190_v6 = vadd.f32 %v1189_v51, %v1188_v2 }
 0x2cd   :  { %v1192_v3 = vadd.f32 %v1191_v55, %v1190_v6 }
 0x2cf   :  { %v1194_v1 = vadd.f32 %v1193_v57, %v1192_v3  ;;  %v1219_v3 = vsub.s32 2, %v3430_v14 }
 0x2d1   :  { %v1196_v21 = vadd.f32 %v1195_v5, %v1194_v1  ;;  %v3945_v1 = vrot.slane %v3435_v16, %v1255_v15 }
 0x2d3   :  { %v1198_v20 = vadd.f32 %v1197_v36, %v1196_v21 }
 0x2d5   :  { %v1200_v48 = vadd.f32 %v1199_v17, %v1198_v20 }
 0x2d7   :  { %v1202_v61 = vadd.f32 %v1201_v7, %v1200_v48 }
 0x2d9   :  { %v1204_v18 = vadd.f32 %v1203_v56, %v1202_v61 }
 0x2db   :  { %v1206_v29 = vadd.f32 %v1205_v39, %v1204_v18 }
 0x2dd   :  { %v1207_v60 = vrot.slane %v1206_v29, 4 }
 0x2df   :  { %v1208_v35 = vadd.f32 %v1207_v60, %v1206_v29 }
 0x2e1   :  { %v1209_v62 = vrot.slane %v1208_v35, 2 }
 0x2e3   :  { %v1210_v53 = vadd.f32 %v1209_v62, %v1208_v35 }
 0x2e5   :  { %v1211_v2 = vrot.slane %v1210_v53, 1 }
 0x2e7   :  { %v1212_v46 = vadd.f32 %v1211_v2, %v1210_v53 }
 0x2e9   :  { %v1213_v51 = vmul.f32 0.00390625, %v1212_v46 }
 0x2eb   :  { %v1214_v6 = vadd.f32 1e-05, %v1213_v51 }
 0x2ed   :  { %2899 = vrsqrt.f32 %v1214_v6 }
 0x2fa   :  { %v2900_v8 = vpop.eup %2899 }
 0x2fb   :  { %v1216_v55 = vmul.f32 %v2900_v8, %v3435_v16 }
 0x2fd   :  { %v3942_v57 = vrot.slane %v1216_v55, %v1219_v3 }
 0x2ff   :  { %v1221_v63 = vmul.f32 %v3942_v57, %v3714_v28  ;;  %v1222_v5 = vmul.f32 %v3942_v57, %v3718_v30  ;;  %v1223_v21 = vmul.f32 %v3942_v57, %v3725_v43  ;;  %v1224_v20 = vmul.f32 %v3942_v57, %v3729_v37 }
 0x300   :  { %v1225_v16 = vmul.f32 %v3942_v57, %v3737_v11  ;;  %v1226_v30 = vmul.f32 %v3942_v57, %v3743_v22  ;;  %v1227_v43 = vmul.f32 %v3942_v57, %v3751_v23  ;;  %v1228_v37 = vmul.f32 %v3942_v57, %v3758_v27 }
 0x301   :  { %v1257_v0 = vadd.f32 %v3945_v1, %v1221_v63  ;;  %v1258_v36 = vadd.f32 %v3945_v1, %v1222_v5  ;;  %v1259_v45 = vadd.f32 %v3945_v1, %v1223_v21  ;;  %v1260_v48 = vadd.f32 %v3945_v1, %v1224_v20 }
 0x302   :  { %v1261_v50 = vadd.f32 %v3945_v1, %v1225_v16  ;;  %v1262_v11 = vadd.f32 %v3945_v1, %v1226_v30  ;;  %v1229_v61 = vmul.f32 %v3942_v57, %v3765_v13  ;;  %v1263_v23 = vadd.f32 %v3945_v1, %v1227_v43 }
 0x303   :  { %v1289_v17 = vmax.f32 %v1257_v0, 0.0  ;;  %v1290_v28 = vmax.f32 %v1258_v36, 0.0  ;;  %v1291_v7 = vmax.f32 %v1259_v45, 0.0  ;;  %v1292_v22 = vmax.f32 %v1260_v48, 0.0 }
 0x304   :  { %v1293_v56 = vmax.f32 %v1261_v50, 0.0  ;;  %v1230_v18 = vmul.f32 %v3942_v57, %v3772_v12  ;;  %v1264_v39 = vadd.f32 %v3945_v1, %v1228_v37  ;;  %v1294_v29 = vmax.f32 %v1262_v11, 0.0 }
 0x305   :  { %2793 = vmatprep.mubr.msk.f32.mxu0 %vm51_vm0, %v1289_v17  ;;  %v1231_v27 = vmul.f32 %v3942_v57, %v3779_v19  ;;  %v1265_v60 = vadd.f32 %v3945_v1, %v1229_v61  ;;  %v1295_v35 = vmax.f32 %v1263_v23, 0.0  ;;  %v1232_v13 = vmul.f32 %v3942_v57, %v3786_v41 }
 0x306   :  { %2794 = vmatmul.mubr.msk.f32.vlgmr.msra.gmra.mxu0 %vm51_vm0, %v1290_v28  ;;  %v1266_v62 = vadd.f32 %v3945_v1, %v1230_v18  ;;  %v1296_v53 = vmax.f32 %v1264_v39, 0.0  ;;  %v1233_v12 = vmul.f32 %v3942_v57, %v3793_v25  ;;  %v1234_v19 = vmul.f32 %v3942_v57, %v3800_v52 }
 0x307   :  { %2796 = vmatprep.mubr.msk.f32.mxu0 %vm51_vm0, %v1291_v7  ;;  %v1267_v2 = vadd.f32 %v3945_v1, %v1231_v27  ;;  %v1297_v46 = vmax.f32 %v1265_v60, 0.0  ;;  %v1268_v51 = vadd.f32 %v3945_v1, %v1232_v13  ;;  %v1235_v41 = vmul.f32 %v3942_v57, %v3807_v31 }
 0x308   :  { %v1298_v6 = vmax.f32 %v1266_v62, 0.0  ;;  %v1269_v8 = vadd.f32 %v3945_v1, %v1233_v12  ;;  %v1236_v25 = vmul.f32 %v3942_v57, %v3814_v42  ;;  %v1270_v3 = vadd.f32 %v3945_v1, %v1234_v19 }
 0x309   :  { %v1299_v55 = vmax.f32 %v1267_v2, 0.0  ;;  %v1300_v15 = vmax.f32 %v1268_v51, 0.0  ;;  %v1237_v52 = vmul.f32 %v3942_v57, %v3821_v40  ;;  %v1271_v63 = vadd.f32 %v3945_v1, %v1235_v41 }
 0x30a   :  { %2797 = vmatmul.mubr.msk.f32.gmra.mxu0 %vm51_vm0, %v1292_v22  ;;  %v1301_v5 = vmax.f32 %v1269_v8, 0.0  ;;  %v1238_v31 = vmul.f32 %v3942_v57, %v3828_v54  ;;  %v1272_v21 = vadd.f32 %v3945_v1, %v1236_v25  ;;  %v1302_v0 = vmax.f32 %v1270_v3, 0.0 }
 0x30b   :  { %2799 = vmatprep.mubr.msk.f32.mxu0 %vm51_vm0, %v1293_v56  ;;  %v1239_v42 = vmul.f32 %v3942_v57, %v3835_v49  ;;  %v1273_v36 = vadd.f32 %v3945_v1, %v1237_v52  ;;  %v1303_v20 = vmax.f32 %v1271_v63, 0.0  ;;  %v1240_v40 = vmul.f32 %v3942_v57, %v3842_v47 }
 0x30c   :  { %v1274_v16 = vadd.f32 %v3945_v1, %v1238_v31  ;;  %v1304_v45 = vmax.f32 %v1272_v21, 0.0  ;;  %v1241_v54 = vmul.f32 %v3942_v57, %v3849_v58  ;;  %v1242_v49 = vmul.f32 %v3942_v57, %v3856_v4 }
 0x30d   :  { %v1275_v17 = vadd.f32 %v3945_v1, %v1239_v42  ;;  %v1305_v28 = vmax.f32 %v1273_v36, 0.0  ;;  %v1276_v30 = vadd.f32 %v3945_v1, %v1240_v40  ;;  %v1243_v47 = vmul.f32 %v3942_v57, %v3863_v10 }
 0x30e   :  { %2800 = vmatmul.mubr.msk.f32.gmra.mxu0 %vm51_vm0, %v1294_v29  ;;  %v1306_v48 = vmax.f32 %v1274_v16, 0.0  ;;  %v1277_v43 = vadd.f32 %v3945_v1, %v1241_v54  ;;  %v1244_v58 = vmul.f32 %v3942_v57, %v3870_v59  ;;  %v1278_v7 = vadd.f32 %v3945_v1, %v1242_v49 }
 0x30f   :  { %2802 = vmatprep.mubr.msk.f32.mxu0 %vm51_vm0, %v1295_v35  ;;  %v1307_v50 = vmax.f32 %v1275_v17, 0.0  ;;  %v1308_v37 = vmax.f32 %v1276_v30, 0.0  ;;  %v1245_v4 = vmul.f32 %v3942_v57, %v3877_v26  ;;  %v1279_v11 = vadd.f32 %v3945_v1, %v1243_v47 }
 0x310   :  { %v1309_v22 = vmax.f32 %v1277_v43, 0.0  ;;  %v1246_v10 = vmul.f32 %v3942_v57, %v3884_v24  ;;  %v1280_v61 = vadd.f32 %v3945_v1, %v1244_v58  ;;  %v1310_v23 = vmax.f32 %v1278_v7, 0.0 }
 0x311   :  { %v1247_v59 = vmul.f32 %v3942_v57, %v3891_v34  ;;  %v1281_v56 = vadd.f32 %v3945_v1, %v1245_v4  ;;  %v1311_v18 = vmax.f32 %v1279_v11, 0.0  ;;  %v1248_v26 = vmul.f32 %v3942_v57, %v3898_v33 }
 0x312   :  { %2803 = vmatmul.mubr.msk.f32.gmra.mxu0 %vm51_vm0, %v1296_v53  ;;  %v1282_v39 = vadd.f32 %v3945_v1, %v1246_v10  ;;  %v1312_v29 = vmax.f32 %v1280_v61, 0.0  ;;  %v1249_v24 = vmul.f32 %v3942_v57, %v3905_v44  ;;  %v1250_v34 = vmul.f32 %v3942_v57, %v3912_v38 }
 0x313   :  { %2805 = vmatprep.mubr.msk.f32.mxu0 %vm51_vm0, %v1297_v46  ;;  %v1283_v27 = vadd.f32 %v3945_v1, %v1247_v59  ;;  %v1313_v60 = vmax.f32 %v1281_v56, 0.0  ;;  %v1284_v35 = vadd.f32 %v3945_v1, %v1248_v26  ;;  %v1251_v33 = vmul.f32 %v3942_v57, %v3919_v32 }
 0x314   :  { %v1314_v13 = vmax.f32 %v1282_v39, 0.0  ;;  %v1285_v62 = vadd.f32 %v3945_v1, %v1249_v24  ;;  %v1252_v44 = vmul.f32 %v3942_v57, %v3926_v9  ;;  %v1286_v12 = vadd.f32 %v3945_v1, %v1250_v34 }
 0x315   :  { %v1315_v53 = vmax.f32 %v1283_v27, 0.0  ;;  %v1316_v2 = vmax.f32 %v1284_v35, 0.0  ;;  %v1287_v38 = vadd.f32 %v3945_v1, %v1251_v33 }
 0x316   :  { %2806 = vmatmul.mubr.msk.f32.gmra.mxu0 %vm51_vm0, %v1298_v6  ;;  %v1317_v46 = vmax.f32 %v1285_v62, 0.0  ;;  %v1288_v32 = vadd.f32 %v3945_v1, %v1252_v44  ;;  %v1318_v19 = vmax.f32 %v1286_v12, 0.0 }
 0x317   :  { %2808 = vmatprep.mubr.msk.f32.mxu0 %vm51_vm0, %v1299_v55  ;;  %v1319_v51 = vmax.f32 %v1287_v38, 0.0 }
 0x318   :  { %v1320_v6 = vmax.f32 %v1288_v32, 0.0 }
 0x31a   :  { %2809 = vmatmul.mubr.msk.f32.gmra.mxu0 %vm51_vm0, %v1300_v15 }
 0x31b   :  { %2811 = vmatprep.mubr.msk.f32.mxu0 %vm51_vm0, %v1301_v5 }
 0x31e   :  { %2812 = vmatmul.mubr.msk.f32.gmra.mxu0 %vm51_vm0, %v1302_v0 }
 0x31f   :  { %2814 = vmatprep.mubr.msk.f32.mxu0 %vm51_vm0, %v1303_v20 }
 0x322   :  { %2815 = vmatmul.mubr.msk.f32.gmra.mxu0 %vm51_vm0, %v1304_v45 }
 0x323   :  { %2817 = vmatprep.mubr.msk.f32.mxu0 %vm51_vm0, %v1305_v28 }
 0x326   :  { %2818 = vmatmul.mubr.msk.f32.gmra.mxu0 %vm51_vm0, %v1306_v48 }
 0x327   :  { %2820 = vmatprep.mubr.msk.f32.mxu0 %vm51_vm0, %v1307_v50 }
 0x32a   :  { %2821 = vmatmul.mubr.msk.f32.gmra.mxu0 %vm51_vm0, %v1308_v37 }
 0x32b   :  { %2823 = vmatprep.mubr.msk.f32.mxu0 %vm51_vm0, %v1309_v22 }
 0x32e   :  { %2824 = vmatmul.mubr.msk.f32.gmra.mxu0 %vm51_vm0, %v1310_v23 }
 0x32f   :  { %2826 = vmatprep.mubr.msk.f32.mxu0 %vm51_vm0, %v1311_v18 }
 0x332   :  { %2827 = vmatmul.mubr.msk.f32.gmra.mxu0 %vm51_vm0, %v1312_v29 }
 0x333   :  { %2829 = vmatprep.mubr.msk.f32.mxu0 %vm51_vm0, %v1313_v60 }
 0x336   :  { %2830 = vmatmul.mubr.msk.f32.gmra.mxu0 %vm51_vm0, %v1314_v13 }
 0x337   :  { %2832 = vmatprep.mubr.msk.f32.mxu0 %vm51_vm0, %v1315_v53 }
 0x33a   :  { %2833 = vmatmul.mubr.msk.f32.gmra.mxu0 %vm51_vm0, %v1316_v2 }
 0x33b   :  { %2835 = vmatprep.mubr.msk.f32.mxu0 %vm51_vm0, %v1317_v46 }
 0x33e   :  { %2836 = vmatmul.mubr.msk.f32.gmra.mxu0 %vm51_vm0, %v1318_v19 }
 0x33f   :  { %2838 = vmatprep.mubr.msk.f32.mxu0 %vm51_vm0, %v1319_v51 }
 0x342   :  { %2839 = vmatmul.mubr.msk.f32.gmra.mxu0 %vm51_vm0, %v1320_v6 }
 0x3c6   :  { %v4075_v9 = vpop.f32.mrf.mxu0 }
 0x3c7   :  { %v1648_v1 = vsel %vm51_vm0, %v4075_v9, 0.0 }
 0x3c8   :  { %v4077_v57 = vpop.f32.mrf.mxu0 }
 0x3c9   :  { %v1647_v41 = vsel %vm51_vm0, %v4077_v57, 0.0 }
 0x3ca   :  { %v4081_v8 = vpop.f32.mrf.mxu0  ;;  %v1649_v55 = vadd.f32 %v1648_v1, %v1647_v41 }
 0x3cb   :  { %v1652_v63 = vsel %vm51_vm0, %v4081_v8, 0.0 }
 0x3cc   :  { %v4085_v25 = vpop.f32.mrf.mxu0 }
 0x3cd   :  { %v1650_v3 = vsel %vm51_vm0, %v4085_v25, 0.0 }
 0x3ce   :  { %v1651_v15 = vadd.f32 %v1650_v3, %v1649_v55  ;;  %v4089_v52 = vpop.f32.mrf.mxu0 }
 0x3cf   :  { %v1656_v36 = vsel %vm51_vm0, %v4089_v52, 0.0 }
 0x3d0   :  { %v4093_v5 = vpop.f32.mrf.mxu0  ;;  %v1653_v31 = vadd.f32 %v1652_v63, %v1651_v15 }
 0x3d1   :  { %v1654_v21 = vsel %vm51_vm0, %v4093_v5, 0.0 }
 0x3d2   :  { %v1655_v0 = vadd.f32 %v1654_v21, %v1653_v31  ;;  %v4097_v42 = vpop.f32.mrf.mxu0 }
 0x3d3   :  { %v1660_v17 = vsel %vm51_vm0, %v4097_v42, 0.0 }
 0x3d4   :  { %v4101_v20 = vpop.f32.mrf.mxu0  ;;  %v1657_v40 = vadd.f32 %v1656_v36, %v1655_v0 }
 0x3d5   :  { %v1658_v16 = vsel %vm51_vm0, %v4101_v20, 0.0 }
 0x3d6   :  { %v1659_v45 = vadd.f32 %v1658_v16, %v1657_v40  ;;  %v4105_v54 = vpop.f32.mrf.mxu0 }
 0x3d7   :  { %v1664_v43 = vsel %vm51_vm0, %v4105_v54, 0.0 }
 0x3d8   :  { %v4109_v28 = vpop.f32.mrf.mxu0  ;;  %v1661_v49 = vadd.f32 %v1660_v17, %v1659_v45 }
 0x3d9   :  { %v1662_v30 = vsel %vm51_vm0, %v4109_v28, 0.0 }
 0x3da   :  { %v1663_v48 = vadd.f32 %v1662_v30, %v1661_v49  ;;  %v4113_v47 = vpop.f32.mrf.mxu0 }
 0x3db   :  { %v1668_v11 = vsel %vm51_vm0, %v4113_v47, 0.0 }
 0x3dc   :  { %v4117_v50 = vpop.f32.mrf.mxu0  ;;  %v1665_v58 = vadd.f32 %v1664_v43, %v1663_v48 }
 0x3dd   :  { %v1666_v7 = vsel %vm51_vm0, %v4117_v50, 0.0 }
 0x3de   :  { %v1667_v37 = vadd.f32 %v1666_v7, %v1665_v58  ;;  %v4121_v4 = vpop.f32.mrf.mxu0 }
 0x3df   :  { %v1672_v56 = vsel %vm51_vm0, %v4121_v4, 0.0 }
 0x3e0   :  { %v4125_v22 = vpop.f32.mrf.mxu0  ;;  %v1669_v10 = vadd.f32 %v1668_v11, %v1667_v37 }
 0x3e1   :  { %v1670_v61 = vsel %vm51_vm0, %v4125_v22, 0.0 }
 0x3e2   :  { %v1671_v23 = vadd.f32 %v1670_v61, %v1669_v10  ;;  %v4129_v59 = vpop.f32.mrf.mxu0 }
 0x3e3   :  { %v1676_v27 = vsel %vm51_vm0, %v4129_v59, 0.0 }
 0x3e4   :  { %v4133_v18 = vpop.f32.mrf.mxu0  ;;  %v1673_v26 = vadd.f32 %v1672_v56, %v1671_v23 }
 0x3e5   :  { %v1674_v39 = vsel %vm51_vm0, %v4133_v18, 0.0 }
 0x3e6   :  { %v1675_v29 = vadd.f32 %v1674_v39, %v1673_v26  ;;  %v4137_v24 = vpop.f32.mrf.mxu0 }
 0x3e7   :  { %v1680_v62 = vsel %vm51_vm0, %v4137_v24, 0.0 }
 0x3e8   :  { %v4141_v60 = vpop.f32.mrf.mxu0  ;;  %v1677_v34 = vadd.f32 %v1676_v27, %v1675_v29 }
 0x3e9   :  { %v1678_v35 = vsel %vm51_vm0, %v4141_v60, 0.0 }
 0x3ea   :  { %v1679_v13 = vadd.f32 %v1678_v35, %v1677_v34  ;;  %v4145_v33 = vpop.f32.mrf.mxu0 }
 0x3eb   :  { %v1684_v46 = vsel %vm51_vm0, %v4145_v33, 0.0 }
 0x3ec   :  { %v4149_v53 = vpop.f32.mrf.mxu0  ;;  %v1681_v44 = vadd.f32 %v1680_v62, %v1679_v13 }
 0x3ed   :  { %v1682_v12 = vsel %vm51_vm0, %v4149_v53, 0.0 }
 0x3ee   :  { %v1683_v2 = vadd.f32 %v1682_v12, %v1681_v44  ;;  %v4153_v38 = vpop.f32.mrf.mxu0 }
 0x3ef   :  { %v1688_v1 = vsel %vm51_vm0, %v4153_v38, 0.0 }
 0x3f0   :  { %v4157_v32 = vpop.f32.mrf.mxu0  ;;  %v1685_v19 = vadd.f32 %v1684_v46, %v1683_v2 }
 0x3f1   :  { %v1686_v51 = vsel %vm51_vm0, %v4157_v32, 0.0 }
 0x3f2   :  { %v1687_v6 = vadd.f32 %v1686_v51, %v1685_v19  ;;  %v4161_v41 = vpop.f32.mrf.mxu0  ;;  %v2496_v19 = vld [vmem:[%s4746_s1 + $0x78] sm:$0xff] }
 0x3f3   :  { %v1692_v21 = vsel %vm51_vm0, %v4161_v41, 0.0  ;;  %2841 = vmatprep.subr.mxu1 %v2496_v19 }
 0x3f4   :  { %v4165_v55 = vpop.f32.mrf.mxu0  ;;  %v1689_v3 = vadd.f32 %v1688_v1, %v1687_v6  ;;  %2842 = vmatpush3.msra.mxu1 %v2496_v19  ;;  %v2495_v6 = vld [vmem:[%s4746_s1 + $0x70] sm:$0xff]  ;;  %v2494_v1 = vld [vmem:[%s4746_s1 + $0x68] sm:$0xff] }
 0x3f5   :  { %v1690_v15 = vsel %vm51_vm0, %v4165_v55, 0.0  ;;  %2843 = vmatprep.subr.mxu1 %v2495_v6 }
 0x3f6   :  { %v1691_v63 = vadd.f32 %v1690_v15, %v1689_v3  ;;  %v4169_v31 = vpop.f32.mrf.mxu0  ;;  %2844 = vmatpush3.msra.mxu1 %v2495_v6 }
 0x3f7   :  { %v1696_v17 = vsel %vm51_vm0, %v4169_v31, 0.0  ;;  %2845 = vmatprep.subr.mxu1 %v2494_v1 }
 0x3f8   :  { %v4173_v0 = vpop.f32.mrf.mxu0  ;;  %v1693_v36 = vadd.f32 %v1692_v21, %v1691_v63  ;;  %2846 = vmatpush3.msra.mxu1 %v2494_v1  ;;  %v2493_v63 = vld [vmem:[%s4746_s1 + $0x60] sm:$0xff] }
 0x3f9   :  { %v1694_v40 = vsel %vm51_vm0, %v4173_v0, 0.0  ;;  %2847 = vmatprep.subr.mxu1 %v2493_v63 }
 0x3fa   :  { %v1695_v16 = vadd.f32 %v1694_v40, %v1693_v36  ;;  %v4177_v45 = vpop.f32.mrf.mxu0  ;;  %2848 = vmatpush3.msra.mxu1 %v2493_v63 }
 0x3fb   :  { %v1700_v7 = vsel %vm51_vm0, %v4177_v45, 0.0 }
 0x3fc   :  { %v4181_v49 = vpop.f32.mrf.mxu0  ;;  %v1697_v30 = vadd.f32 %v1696_v17, %v1695_v16 }
 0x3fd   :  { %v1698_v48 = vsel %vm51_vm0, %v4181_v49, 0.0 }
 0x3fe   :  { %v1699_v43 = vadd.f32 %v1698_v48, %v1697_v30  ;;  %v4185_v58 = vpop.f32.mrf.mxu0 }
 0x3ff   :  { %v1704_v56 = vsel %vm51_vm0, %v4185_v58, 0.0 }
 0x400   :  { %v4189_v37 = vpop.f32.mrf.mxu0  ;;  %v1701_v11 = vadd.f32 %v1700_v7, %v1699_v43 }
 0x401   :  { %v1702_v10 = vsel %vm51_vm0, %v4189_v37, 0.0 }
 0x402   :  { %v1703_v61 = vadd.f32 %v1702_v10, %v1701_v11  ;;  %v4193_v23 = vpop.f32.mrf.mxu0 }
 0x403   :  { %v1708_v34 = vsel %vm51_vm0, %v4193_v23, 0.0 }
 0x404   :  { %v4197_v26 = vpop.f32.mrf.mxu0  ;;  %v1705_v39 = vadd.f32 %v1704_v56, %v1703_v61 }
 0x405   :  { %v1706_v29 = vsel %vm51_vm0, %v4197_v26, 0.0 }
 0x406   :  { %v1707_v27 = vadd.f32 %v1706_v29, %v1705_v39 }
 0x408   :  { %v1709_v35 = vadd.f32 %v1708_v34, %v1707_v27 }
 0x40a   :  { %v1710_v13 = vrot.slane %v1709_v35, 4 }
 0x40c   :  { %v1711_v62 = vadd.f32 %v1710_v13, %v1709_v35 }
 0x40e   :  { %v1712_v44 = vrot.slane %v1711_v62, 2 }
 0x410   :  { %v1713_v12 = vadd.f32 %v1712_v44, %v1711_v62 }
 0x412   :  { %v1714_v2 = vrot.slane %v1713_v12, 1 }
 0x414   :  { %v1715_v46 = vadd.f32 %v1714_v2, %v1713_v12 }
 0x416   :  { %v4206_v51 = vmul.f32 0.00390625, %v1715_v46 }
 0x418   :  { %v4216_v3 = vsub.f32 %v4077_v57, %v4206_v51  ;;  %v4220_v15 = vsub.f32 %v4075_v9, %v4206_v51  ;;  %v4227_v21 = vsub.f32 %v4085_v25, %v4206_v51  ;;  %v4231_v36 = vsub.f32 %v4081_v8, %v4206_v51 }
 0x419   :  { %v4239_v40 = vsub.f32 %v4093_v5, %v4206_v51  ;;  %v4245_v25 = vsub.f32 %v4089_v52, %v4206_v51  ;;  %v4253_v43 = vsub.f32 %v4101_v20, %v4206_v51  ;;  %v4260_v52 = vsub.f32 %v4097_v42, %v4206_v51 }
 0x41a   :  { %v1749_v57 = vmul.f32 %v4216_v3, %v4216_v3  ;;  %v1750_v9 = vmul.f32 %v4220_v15, %v4220_v15  ;;  %v1751_v16 = vmul.f32 %v4227_v21, %v4227_v21  ;;  %v1752_v8 = vmul.f32 %v4231_v36, %v4231_v36 }
 0x41b   :  { %v1753_v5 = vmul.f32 %v4239_v40, %v4239_v40  ;;  %v1754_v10 = vmul.f32 %v4245_v25, %v4245_v25  ;;  %v4267_v20 = vsub.f32 %v4109_v28, %v4206_v51  ;;  %v1755_v39 = vmul.f32 %v4253_v43, %v4253_v43 }
 0x41c   :  { %v1781_v17 = vsel %vm51_vm0, %v1749_v57, 0.0  ;;  %v1782_v30 = vsel %vm51_vm0, %v1750_v9, 0.0  ;;  %v1784_v7 = vsel %vm51_vm0, %v1751_v16, 0.0  ;;  %v1786_v61 = vsel %vm51_vm0, %v1752_v8, 0.0 }
 0x41d   :  { %v1783_v48 = vadd.f32 %v1782_v30, %v1781_v17  ;;  %v1788_v29 = vsel %vm51_vm0, %v1753_v5, 0.0  ;;  %v4274_v42 = vsub.f32 %v4105_v54, %v4206_v51  ;;  %v1756_v34 = vmul.f32 %v4260_v52, %v4260_v52 }
 0x41e   :  { %v1790_v35 = vsel %vm51_vm0, %v1754_v10, 0.0  ;;  %v4281_v28 = vsub.f32 %v4117_v50, %v4206_v51  ;;  %v1757_v62 = vmul.f32 %v4267_v20, %v4267_v20  ;;  %v1792_v44 = vsel %vm51_vm0, %v1755_v39, 0.0 }
 0x41f   :  { %v1785_v11 = vadd.f32 %v1784_v7, %v1783_v48  ;;  %v4288_v54 = vsub.f32 %v4113_v47, %v4206_v51  ;;  %v1758_v2 = vmul.f32 %v4274_v42, %v4274_v42  ;;  %v1794_v46 = vsel %vm51_vm0, %v1756_v34, 0.0 }
 0x420   :  { %v4295_v50 = vsub.f32 %v4125_v22, %v4206_v51  ;;  %v1759_v6 = vmul.f32 %v4281_v28, %v4281_v28  ;;  %v1796_v1 = vsel %vm51_vm0, %v1757_v62, 0.0  ;;  %v4302_v47 = vsub.f32 %v4121_v4, %v4206_v51 }
 0x421   :  { %v1787_v56 = vadd.f32 %v1786_v61, %v1785_v11  ;;  %v1760_v57 = vmul.f32 %v4288_v54, %v4288_v54  ;;  %v1798_v9 = vsel %vm51_vm0, %v1758_v2, 0.0  ;;  %v4309_v22 = vsub.f32 %v4133_v18, %v4206_v51 }
 0x422   :  { %v1761_v8 = vmul.f32 %v4295_v50, %v4295_v50  ;;  %v1800_v17 = vsel %vm51_vm0, %v1759_v6, 0.0  ;;  %v4316_v4 = vsub.f32 %v4129_v59, %v4206_v51  ;;  %v1762_v48 = vmul.f32 %v4302_v47, %v4302_v47 }
 0x423   :  { %v1789_v27 = vadd.f32 %v1788_v29, %v1787_v56  ;;  %v1802_v5 = vsel %vm51_vm0, %v1760_v57, 0.0  ;;  %v4323_v18 = vsub.f32 %v4141_v60, %v4206_v51  ;;  %v1763_v11 = vmul.f32 %v4309_v22, %v4309_v22 }
 0x424   :  { %v1804_v10 = vsel %vm51_vm0, %v1761_v8, 0.0  ;;  %v4330_v59 = vsub.f32 %v4137_v24, %v4206_v51  ;;  %v1764_v56 = vmul.f32 %v4316_v4, %v4316_v4  ;;  %v1806_v39 = vsel %vm51_vm0, %v1762_v48, 0.0 }
 0x425   :  { %v1791_v13 = vadd.f32 %v1790_v35, %v1789_v27  ;;  %v4337_v60 = vsub.f32 %v4149_v53, %v4206_v51  ;;  %v1765_v27 = vmul.f32 %v4323_v18, %v4323_v18  ;;  %v1808_v34 = vsel %vm51_vm0, %v1763_v11, 0.0 }
 0x426   :  { %v4344_v24 = vsub.f32 %v4145_v33, %v4206_v51  ;;  %v1810_v62 = vsel %vm51_vm0, %v1764_v56, 0.0  ;;  %v4351_v53 = vsub.f32 %v4157_v32, %v4206_v51  ;;  %v4358_v33 = vsub.f32 %v4153_v38, %v4206_v51 }
 0x427   :  { %v1793_v12 = vadd.f32 %v1792_v44, %v1791_v13  ;;  %v1766_v13 = vmul.f32 %v4330_v59, %v4330_v59  ;;  %v1812_v2 = vsel %vm51_vm0, %v1765_v27, 0.0  ;;  %v4365_v32 = vsub.f32 %v4165_v55, %v4206_v51 }
 0x428   :  { %v4372_v38 = vsub.f32 %v4161_v41, %v4206_v51  ;;  %v4379_v55 = vsub.f32 %v4173_v0, %v4206_v51  ;;  %v4386_v41 = vsub.f32 %v4169_v31, %v4206_v51  ;;  %v4393_v0 = vsub.f32 %v4181_v49, %v4206_v51 }
 0x429   :  { %v1795_v19 = vadd.f32 %v1794_v46, %v1793_v12  ;;  %v1767_v12 = vmul.f32 %v4337_v60, %v4337_v60  ;;  %v1814_v6 = vsel %vm51_vm0, %v1766_v13, 0.0  ;;  %v4400_v31 = vsub.f32 %v4177_v45, %v4206_v51 }
 0x42a   :  { %v4407_v49 = vsub.f32 %v4189_v37, %v4206_v51  ;;  %v4414_v45 = vsub.f32 %v4185_v58, %v4206_v51  ;;  %v4421_v37 = vsub.f32 %v4197_v26, %v4206_v51  ;;  %v4428_v58 = vsub.f32 %v4193_v23, %v4206_v51 }
 0x42b   :  { %v1797_v63 = vadd.f32 %v1796_v1, %v1795_v19  ;;  %v1768_v19 = vmul.f32 %v4344_v24, %v4344_v24  ;;  %v1816_v57 = vsel %vm51_vm0, %v1767_v12, 0.0 }
 0x42c   :  { %v1779_v26 = vmul.f32 %v4421_v37, %v4421_v37 }
 0x42d   :  { %v1799_v16 = vadd.f32 %v1798_v9, %v1797_v63  ;;  %v1769_v63 = vmul.f32 %v4351_v53, %v4351_v53  ;;  %v1818_v8 = vsel %vm51_vm0, %v1768_v19, 0.0 }
 0x42e   :  { %v1840_v23 = vsel %vm51_vm0, %v1779_v26, 0.0 }
 0x42f   :  { %v1801_v30 = vadd.f32 %v1800_v17, %v1799_v16  ;;  %v1770_v16 = vmul.f32 %v4358_v33, %v4358_v33  ;;  %v1820_v48 = vsel %vm51_vm0, %v1769_v63, 0.0 }
 0x431   :  { %v1803_v7 = vadd.f32 %v1802_v5, %v1801_v30  ;;  %v1771_v30 = vmul.f32 %v4365_v32, %v4365_v32  ;;  %v1822_v11 = vsel %vm51_vm0, %v1770_v16, 0.0 }
 0x433   :  { %v1805_v61 = vadd.f32 %v1804_v10, %v1803_v7  ;;  %v1772_v7 = vmul.f32 %v4372_v38, %v4372_v38  ;;  %v1824_v56 = vsel %vm51_vm0, %v1771_v30, 0.0 }
 0x435   :  { %v1807_v29 = vadd.f32 %v1806_v39, %v1805_v61  ;;  %v1773_v61 = vmul.f32 %v4379_v55, %v4379_v55  ;;  %v1826_v27 = vsel %vm51_vm0, %v1772_v7, 0.0 }
 0x437   :  { %v1809_v35 = vadd.f32 %v1808_v34, %v1807_v29  ;;  %v1774_v29 = vmul.f32 %v4386_v41, %v4386_v41  ;;  %v1828_v13 = vsel %vm51_vm0, %v1773_v61, 0.0 }
 0x439   :  { %v1811_v44 = vadd.f32 %v1810_v62, %v1809_v35  ;;  %v1775_v35 = vmul.f32 %v4393_v0, %v4393_v0  ;;  %v1830_v12 = vsel %vm51_vm0, %v1774_v29, 0.0 }
 0x43b   :  { %v1813_v46 = vadd.f32 %v1812_v2, %v1811_v44  ;;  %v1776_v44 = vmul.f32 %v4400_v31, %v4400_v31  ;;  %v1832_v19 = vsel %vm51_vm0, %v1775_v35, 0.0  ;;  %v4444_v35 = vld [vmem:[%s4748_s2] sm:$0xff] }
 0x43d   :  { %v1815_v1 = vadd.f32 %v1814_v6, %v1813_v46  ;;  %v1777_v46 = vmul.f32 %v4407_v49, %v4407_v49  ;;  %v1834_v63 = vsel %vm51_vm0, %v1776_v44, 0.0  ;;  %v1892_v44 = vsub.s32 5, %v3430_v14 }
 0x43f   :  { %v1817_v9 = vadd.f32 %v1816_v57, %v1815_v1  ;;  %v1778_v1 = vmul.f32 %v4414_v45, %v4414_v45 }
 0x441   :  { %v1819_v17 = vadd.f32 %v1818_v8, %v1817_v9  ;;  %v1836_v9 = vsel %vm51_vm0, %v1777_v46, 0.0  ;;  %v1780_v8 = vmul.f32 %v4428_v58, %v4428_v58 }
 0x443   :  { %v1821_v5 = vadd.f32 %v1820_v48, %v1819_v17  ;;  %v1838_v17 = vsel %vm51_vm0, %v1778_v1, 0.0  ;;  %v1842_v48 = vsel %vm51_vm0, %v1780_v8, 0.0 }
 0x445   :  { %v1823_v10 = vadd.f32 %v1822_v11, %v1821_v5 }
 0x447   :  { %v1825_v39 = vadd.f32 %v1824_v56, %v1823_v10 }
 0x449   :  { %v1827_v34 = vadd.f32 %v1826_v27, %v1825_v39 }
 0x44b   :  { %v1829_v62 = vadd.f32 %v1828_v13, %v1827_v34 }
 0x44d   :  { %v1831_v2 = vadd.f32 %v1830_v12, %v1829_v62  ;;  %v1856_v62 = vsub.s32 4, %v3430_v14 }
 0x44f   :  { %v1833_v6 = vadd.f32 %v1832_v19, %v1831_v2  ;;  %v4452_v2 = vrot.slane %v4444_v35, %v1892_v44 }
 0x451   :  { %v1835_v57 = vadd.f32 %v1834_v63, %v1833_v6 }
 0x453   :  { %v1837_v16 = vadd.f32 %v1836_v9, %v1835_v57 }
 0x455   :  { %v1839_v30 = vadd.f32 %v1838_v17, %v1837_v16 }
 0x457   :  { %v1841_v51 = vadd.f32 %v1840_v23, %v1839_v30 }
 0x459   :  { %v1843_v5 = vadd.f32 %v1842_v48, %v1841_v51 }
 0x45b   :  { %v1844_v7 = vrot.slane %v1843_v5, 4 }
 0x45d   :  { %v1845_v11 = vadd.f32 %v1844_v7, %v1843_v5 }
 0x45f   :  { %v1846_v10 = vrot.slane %v1845_v11, 2 }
 0x461   :  { %v1847_v61 = vadd.f32 %v1846_v10, %v1845_v11 }
 0x463   :  { %v1848_v56 = vrot.slane %v1847_v61, 1 }
 0x465   :  { %v1849_v39 = vadd.f32 %v1848_v56, %v1847_v61 }
 0x467   :  { %v1850_v29 = vmul.f32 0.00390625, %v1849_v39 }
 0x469   :  { %v1851_v27 = vadd.f32 1e-05, %v1850_v29 }
 0x46b   :  { %2901 = vrsqrt.f32 %v1851_v27 }
 0x478   :  { %v2902_v34 = vpop.eup %2901 }
 0x479   :  { %v1853_v13 = vmul.f32 %v4444_v35, %v2902_v34 }
 0x47b   :  { %v4449_v12 = vrot.slane %v1853_v13, %v1856_v62 }
 0x47d   :  { %v1858_v46 = vmul.f32 %v4449_v12, %v4216_v3  ;;  %v1859_v19 = vmul.f32 %v4449_v12, %v4220_v15  ;;  %v1860_v6 = vmul.f32 %v4449_v12, %v4227_v21  ;;  %v1861_v57 = vmul.f32 %v4449_v12, %v4231_v36 }
 0x47e   :  { %v1862_v26 = vmul.f32 %v4449_v12, %v4239_v40  ;;  %v1863_v15 = vmul.f32 %v4449_v12, %v4245_v25  ;;  %v1864_v21 = vmul.f32 %v4449_v12, %v4253_v43  ;;  %v1865_v36 = vmul.f32 %v4449_v12, %v4260_v52 }
 0x47f   :  { %v1894_v1 = vadd.f32 %v4452_v2, %v1858_v46  ;;  %v1895_v63 = vadd.f32 %v4452_v2, %v1859_v19  ;;  %v1896_v9 = vadd.f32 %v4452_v2, %v1860_v6  ;;  %v1897_v8 = vadd.f32 %v4452_v2, %v1861_v57 }
 0x480   :  { %v1898_v17 = vadd.f32 %v4452_v2, %v1862_v26  ;;  %v1899_v40 = vadd.f32 %v4452_v2, %v1863_v15  ;;  %v1866_v23 = vmul.f32 %v4449_v12, %v4267_v20  ;;  %v1900_v43 = vadd.f32 %v4452_v2, %v1864_v21 }
 0x481   :  { %v1926_v16 = vmax.f32 %v1894_v1, 0.0  ;;  %v1927_v3 = vmax.f32 %v1895_v63, 0.0  ;;  %v1928_v30 = vmax.f32 %v1896_v9, 0.0  ;;  %v1929_v25 = vmax.f32 %v1897_v8, 0.0 }
 0x482   :  { %v1930_v51 = vmax.f32 %v1898_v17, 0.0  ;;  %v1867_v48 = vmul.f32 %v4449_v12, %v4274_v42  ;;  %v1901_v5 = vadd.f32 %v4452_v2, %v1865_v36  ;;  %v1931_v7 = vmax.f32 %v1899_v40, 0.0 }
 0x483   :  { %2849 = vmatprep.mubr.msk.f32.mxu1 %vm51_vm0, %v1926_v16  ;;  %v1868_v52 = vmul.f32 %v4449_v12, %v4281_v28  ;;  %v1902_v11 = vadd.f32 %v4452_v2, %v1866_v23  ;;  %v1932_v10 = vmax.f32 %v1900_v43, 0.0  ;;  %v1869_v20 = vmul.f32 %v4449_v12, %v4288_v54 }
 0x484   :  { %2850 = vmatmul.mubr.msk.f32.vlgmr.msra.gmra.mxu1 %vm51_vm0, %v1927_v3  ;;  %v1903_v61 = vadd.f32 %v4452_v2, %v1867_v48  ;;  %v1933_v56 = vmax.f32 %v1901_v5, 0.0  ;;  %v1870_v42 = vmul.f32 %v4449_v12, %v4295_v50  ;;  %v1871_v28 = vmul.f32 %v4449_v12, %v4302_v47 }
 0x485   :  { %2852 = vmatprep.mubr.msk.f32.mxu1 %vm51_vm0, %v1928_v30  ;;  %v1904_v39 = vadd.f32 %v4452_v2, %v1868_v52  ;;  %v1934_v29 = vmax.f32 %v1902_v11, 0.0  ;;  %v1905_v27 = vadd.f32 %v4452_v2, %v1869_v20  ;;  %v1872_v54 = vmul.f32 %v4449_v12, %v4309_v22 }
 0x486   :  { %v1935_v34 = vmax.f32 %v1903_v61, 0.0  ;;  %v1906_v13 = vadd.f32 %v4452_v2, %v1870_v42  ;;  %v1873_v50 = vmul.f32 %v4449_v12, %v4316_v4  ;;  %v1907_v44 = vadd.f32 %v4452_v2, %v1871_v28 }
 0x487   :  { %v1936_v62 = vmax.f32 %v1904_v39, 0.0  ;;  %v1937_v46 = vmax.f32 %v1905_v27, 0.0  ;;  %v1874_v47 = vmul.f32 %v4449_v12, %v4323_v18  ;;  %v1908_v19 = vadd.f32 %v4452_v2, %v1872_v54 }
 0x488   :  { %2853 = vmatmul.mubr.msk.f32.gmra.mxu1 %vm51_vm0, %v1929_v25  ;;  %v1938_v6 = vmax.f32 %v1906_v13, 0.0  ;;  %v1875_v22 = vmul.f32 %v4449_v12, %v4330_v59  ;;  %v1909_v1 = vadd.f32 %v4452_v2, %v1873_v50  ;;  %v1939_v63 = vmax.f32 %v1907_v44, 0.0 }
 0x489   :  { %2855 = vmatprep.mubr.msk.f32.mxu1 %vm51_vm0, %v1930_v51  ;;  %v1876_v4 = vmul.f32 %v4449_v12, %v4337_v60  ;;  %v1910_v57 = vadd.f32 %v4452_v2, %v1874_v47  ;;  %v1940_v26 = vmax.f32 %v1908_v19, 0.0  ;;  %v1877_v18 = vmul.f32 %v4449_v12, %v4344_v24 }
 0x48a   :  { %v1911_v9 = vadd.f32 %v4452_v2, %v1875_v22  ;;  %v1941_v16 = vmax.f32 %v1909_v1, 0.0  ;;  %v1878_v59 = vmul.f32 %v4449_v12, %v4351_v53  ;;  %v1879_v60 = vmul.f32 %v4449_v12, %v4358_v33 }
 0x48b   :  { %v1912_v3 = vadd.f32 %v4452_v2, %v1876_v4  ;;  %v1942_v15 = vmax.f32 %v1910_v57, 0.0  ;;  %v1913_v8 = vadd.f32 %v4452_v2, %v1877_v18  ;;  %v1880_v24 = vmul.f32 %v4449_v12, %v4365_v32 }
 0x48c   :  { %2856 = vmatmul.mubr.msk.f32.gmra.mxu1 %vm51_vm0, %v1931_v7  ;;  %v1943_v21 = vmax.f32 %v1911_v9, 0.0  ;;  %v1914_v17 = vadd.f32 %v4452_v2, %v1878_v59  ;;  %v1881_v53 = vmul.f32 %v4449_v12, %v4372_v38  ;;  %v1915_v36 = vadd.f32 %v4452_v2, %v1879_v60 }
 0x48d   :  { %2858 = vmatprep.mubr.msk.f32.mxu1 %vm51_vm0, %v1932_v10  ;;  %v1944_v30 = vmax.f32 %v1912_v3, 0.0  ;;  %v1945_v40 = vmax.f32 %v1913_v8, 0.0  ;;  %v1882_v33 = vmul.f32 %v4449_v12, %v4379_v55  ;;  %v1916_v25 = vadd.f32 %v4452_v2, %v1880_v24 }
 0x48e   :  { %v1946_v23 = vmax.f32 %v1914_v17, 0.0  ;;  %v1883_v32 = vmul.f32 %v4449_v12, %v4386_v41  ;;  %v1917_v43 = vadd.f32 %v4452_v2, %v1881_v53  ;;  %v1947_v51 = vmax.f32 %v1915_v36, 0.0 }
 0x48f   :  { %v1884_v38 = vmul.f32 %v4449_v12, %v4393_v0  ;;  %v1918_v48 = vadd.f32 %v4452_v2, %v1882_v33  ;;  %v1948_v5 = vmax.f32 %v1916_v25, 0.0  ;;  %v1885_v55 = vmul.f32 %v4449_v12, %v4400_v31 }
 0x490   :  { %2859 = vmatmul.mubr.msk.f32.gmra.mxu1 %vm51_vm0, %v1933_v56  ;;  %v1919_v7 = vadd.f32 %v4452_v2, %v1883_v32  ;;  %v1949_v52 = vmax.f32 %v1917_v43, 0.0  ;;  %v1886_v41 = vmul.f32 %v4449_v12, %v4407_v49  ;;  %v1887_v0 = vmul.f32 %v4449_v12, %v4414_v45 }
 0x491   :  { %2861 = vmatprep.mubr.msk.f32.mxu1 %vm51_vm0, %v1934_v29  ;;  %v1920_v11 = vadd.f32 %v4452_v2, %v1884_v38  ;;  %v1950_v10 = vmax.f32 %v1918_v48, 0.0  ;;  %v1921_v20 = vadd.f32 %v4452_v2, %v1885_v55  ;;  %v1888_v31 = vmul.f32 %v4449_v12, %v4421_v37 }
 0x492   :  { %v1951_v61 = vmax.f32 %v1919_v7, 0.0  ;;  %v1922_v56 = vadd.f32 %v4452_v2, %v1886_v41  ;;  %v1889_v49 = vmul.f32 %v4449_v12, %v4428_v58  ;;  %v1923_v39 = vadd.f32 %v4452_v2, %v1887_v0 }
 0x493   :  { %v1952_v42 = vmax.f32 %v1920_v11, 0.0  ;;  %v1953_v29 = vmax.f32 %v1921_v20, 0.0  ;;  %v1924_v45 = vadd.f32 %v4452_v2, %v1888_v31  ;;  %v2286_v58 = vsub.s32 6, %v3430_v14 }
 0x494   :  { %2862 = vmatmul.mubr.msk.f32.gmra.mxu1 %vm51_vm0, %v1935_v34  ;;  %v1954_v28 = vmax.f32 %v1922_v56, 0.0  ;;  %v1925_v37 = vadd.f32 %v4452_v2, %v1889_v49  ;;  %v1955_v27 = vmax.f32 %v1923_v39, 0.0 }
 0x495   :  { %2864 = vmatprep.mubr.msk.f32.mxu1 %vm51_vm0, %v1936_v62  ;;  %v1956_v34 = vmax.f32 %v1924_v45, 0.0  ;;  %v4584_v12 = vrot.slane %v4444_v35, %v2286_v58 }
 0x496   :  { %v1957_v54 = vmax.f32 %v1925_v37, 0.0 }
 0x498   :  { %2865 = vmatmul.mubr.msk.f32.gmra.mxu1 %vm51_vm0, %v1937_v46 }
 0x499   :  { %2867 = vmatprep.mubr.msk.f32.mxu1 %vm51_vm0, %v1938_v6 }
 0x49c   :  { %2868 = vmatmul.mubr.msk.f32.gmra.mxu1 %vm51_vm0, %v1939_v63 }
 0x49d   :  { %2870 = vmatprep.mubr.msk.f32.mxu1 %vm51_vm0, %v1940_v26 }
 0x4a0   :  { %2871 = vmatmul.mubr.msk.f32.gmra.mxu1 %vm51_vm0, %v1941_v16 }
 0x4a1   :  { %2873 = vmatprep.mubr.msk.f32.mxu1 %vm51_vm0, %v1942_v15 }
 0x4a4   :  { %2874 = vmatmul.mubr.msk.f32.gmra.mxu1 %vm51_vm0, %v1943_v21 }
 0x4a5   :  { %2876 = vmatprep.mubr.msk.f32.mxu1 %vm51_vm0, %v1944_v30 }
 0x4a8   :  { %2877 = vmatmul.mubr.msk.f32.gmra.mxu1 %vm51_vm0, %v1945_v40 }
 0x4a9   :  { %2879 = vmatprep.mubr.msk.f32.mxu1 %vm51_vm0, %v1946_v23 }
 0x4ac   :  { %2880 = vmatmul.mubr.msk.f32.gmra.mxu1 %vm51_vm0, %v1947_v51 }
 0x4ad   :  { %2882 = vmatprep.mubr.msk.f32.mxu1 %vm51_vm0, %v1948_v5 }
 0x4b0   :  { %2883 = vmatmul.mubr.msk.f32.gmra.mxu1 %vm51_vm0, %v1949_v52 }
 0x4b1   :  { %2885 = vmatprep.mubr.msk.f32.mxu1 %vm51_vm0, %v1950_v10 }
 0x4b4   :  { %2886 = vmatmul.mubr.msk.f32.gmra.mxu1 %vm51_vm0, %v1951_v61 }
 0x4b5   :  { %2888 = vmatprep.mubr.msk.f32.mxu1 %vm51_vm0, %v1952_v42 }
 0x4b8   :  { %2889 = vmatmul.mubr.msk.f32.gmra.mxu1 %vm51_vm0, %v1953_v29 }
 0x4b9   :  { %2891 = vmatprep.mubr.msk.f32.mxu1 %vm51_vm0, %v1954_v28 }
 0x4bc   :  { %2892 = vmatmul.mubr.msk.f32.gmra.mxu1 %vm51_vm0, %v1955_v27 }
 0x4bd   :  { %2894 = vmatprep.mubr.msk.f32.mxu1 %vm51_vm0, %v1956_v34 }
 0x4c0   :  { %2895 = vmatmul.mubr.msk.f32.gmra.mxu1 %vm51_vm0, %v1957_v54 }
 0x544   :  { %v2851_v13 = vpop.f32.mrf.mxu1 }
 0x545   :  { %v2289_v62 = vadd.f32 %v2851_v13, %v4584_v12 }
 0x546   :  { %v2125_v50 = vpop.f32.mrf.mxu1 }
 0x547   :  { %v2321_v2 = vmax.f32 %v2289_v62, 0.0  ;;  %v2288_v44 = vadd.f32 %v4584_v12, %v2125_v50 }
 0x548   :  { %v2854_v46 = vpop.f32.mrf.mxu1 }
 0x549   :  { %2354 = vst.msk [vmem:[%s4749_s3 + $0x8] sm:$0xff] %vm2352_vm1, %v2321_v2  ;;  %v2320_v47 = vmax.f32 %v2288_v44, 0.0  ;;  %v2291_v14 = vadd.f32 %v2854_v46, %v4584_v12 }
 0x54a   :  { %v2135_v19 = vpop.f32.mrf.mxu1 }
 0x54b   :  { %2353 = vst.msk [vmem:[%s4749_s3] sm:$0xff] %vm2352_vm1, %v2320_v47  ;;  %v2323_v35 = vmax.f32 %v2291_v14, 0.0  ;;  %v2290_v6 = vadd.f32 %v4584_v12, %v2135_v19 }
 0x54c   :  { %v2857_v22 = vpop.f32.mrf.mxu1 }
 0x54d   :  { %2356 = vst.msk [vmem:[%s4749_s3 + $0x18] sm:$0xff] %vm2352_vm1, %v2323_v35  ;;  %v2322_v1 = vmax.f32 %v2290_v6, 0.0  ;;  %v2293_v63 = vadd.f32 %v2857_v22, %v4584_v12 }
 0x54e   :  { %v2145_v4 = vpop.f32.mrf.mxu1 }
 0x54f   :  { %2355 = vst.msk [vmem:[%s4749_s3 + $0x10] sm:$0xff] %vm2352_vm1, %v2322_v1  ;;  %v2325_v57 = vmax.f32 %v2293_v63, 0.0  ;;  %v2292_v26 = vadd.f32 %v4584_v12, %v2145_v4 }
 0x550   :  { %v2860_v18 = vpop.f32.mrf.mxu1 }
 0x551   :  { %2358 = vst.msk [vmem:[%s4749_s3 + $0x28] sm:$0xff] %vm2352_vm1, %v2325_v57  ;;  %v2324_v9 = vmax.f32 %v2292_v26, 0.0  ;;  %v2295_v16 = vadd.f32 %v2860_v18, %v4584_v12 }
 0x552   :  { %v2155_v59 = vpop.f32.mrf.mxu1 }
 0x553   :  { %2357 = vst.msk [vmem:[%s4749_s3 + $0x20] sm:$0xff] %vm2352_vm1, %v2324_v9  ;;  %v2327_v3 = vmax.f32 %v2295_v16, 0.0  ;;  %v2294_v15 = vadd.f32 %v4584_v12, %v2155_v59 }
 0x554   :  { %v2863_v60 = vpop.f32.mrf.mxu1 }
 0x555   :  { %2360 = vst.msk [vmem:[%s4749_s3 + $0x38] sm:$0xff] %vm2352_vm1, %v2327_v3  ;;  %v2326_v8 = vmax.f32 %v2294_v15, 0.0  ;;  %v2297_v21 = vadd.f32 %v2863_v60, %v4584_v12 }
 0x556   :  { %v2165_v24 = vpop.f32.mrf.mxu1 }
 0x557   :  { %2359 = vst.msk [vmem:[%s4749_s3 + $0x30] sm:$0xff] %vm2352_vm1, %v2326_v8  ;;  %v2329_v17 = vmax.f32 %v2297_v21, 0.0  ;;  %v2296_v30 = vadd.f32 %v4584_v12, %v2165_v24 }
 0x558   :  { %v2866_v53 = vpop.f32.mrf.mxu1 }
 0x559   :  { %2362 = vst.msk [vmem:[%s4749_s3 + $0x48] sm:$0xff] %vm2352_vm1, %v2329_v17  ;;  %v2328_v36 = vmax.f32 %v2296_v30, 0.0  ;;  %v2299_v40 = vadd.f32 %v2866_v53, %v4584_v12 }
 0x55a   :  { %v2175_v33 = vpop.f32.mrf.mxu1 }
 0x55b   :  { %2361 = vst.msk [vmem:[%s4749_s3 + $0x40] sm:$0xff] %vm2352_vm1, %v2328_v36  ;;  %v2331_v25 = vmax.f32 %v2299_v40, 0.0  ;;  %v2298_v23 = vadd.f32 %v4584_v12, %v2175_v33 }
 0x55c   :  { %v2869_v32 = vpop.f32.mrf.mxu1 }
 0x55d   :  { %2364 = vst.msk [vmem:[%s4749_s3 + $0x58] sm:$0xff] %vm2352_vm1, %v2331_v25  ;;  %v2330_v43 = vmax.f32 %v2298_v23, 0.0  ;;  %v2301_v51 = vadd.f32 %v2869_v32, %v4584_v12 }
 0x55e   :  { %v2185_v38 = vpop.f32.mrf.mxu1 }
 0x55f   :  { %2363 = vst.msk [vmem:[%s4749_s3 + $0x50] sm:$0xff] %vm2352_vm1, %v2330_v43  ;;  %v2333_v48 = vmax.f32 %v2301_v51, 0.0  ;;  %v2300_v5 = vadd.f32 %v4584_v12, %v2185_v38 }
 0x560   :  { %v2872_v55 = vpop.f32.mrf.mxu1 }
 0x561   :  { %2366 = vst.msk [vmem:[%s4749_s3 + $0x68] sm:$0xff] %vm2352_vm1, %v2333_v48  ;;  %v2332_v7 = vmax.f32 %v2300_v5, 0.0  ;;  %v2303_v52 = vadd.f32 %v2872_v55, %v4584_v12 }
 0x562   :  { %v2195_v41 = vpop.f32.mrf.mxu1 }
 0x563   :  { %2365 = vst.msk [vmem:[%s4749_s3 + $0x60] sm:$0xff] %vm2352_vm1, %v2332_v7  ;;  %v2335_v11 = vmax.f32 %v2303_v52, 0.0  ;;  %v2302_v10 = vadd.f32 %v4584_v12, %v2195_v41 }
 0x564   :  { %v2875_v0 = vpop.f32.mrf.mxu1 }
 0x565   :  { %2368 = vst.msk [vmem:[%s4749_s3 + $0x78] sm:$0xff] %vm2352_vm1, %v2335_v11  ;;  %v2334_v20 = vmax.f32 %v2302_v10, 0.0  ;;  %v2305_v61 = vadd.f32 %v2875_v0, %v4584_v12 }
 0x566   :  { %v2205_v31 = vpop.f32.mrf.mxu1 }
 0x567   :  { %2367 = vst.msk [vmem:[%s4749_s3 + $0x70] sm:$0xff] %vm2352_vm1, %v2334_v20  ;;  %v2337_v56 = vmax.f32 %v2305_v61, 0.0  ;;  %v2304_v42 = vadd.f32 %v4584_v12, %v2205_v31 }
 0x568   :  { %v2878_v49 = vpop.f32.mrf.mxu1 }
 0x569   :  { %2370 = vst.msk [vmem:[%s4749_s3 + $0x88] sm:$0xff] %vm2352_vm1, %v2337_v56  ;;  %v2336_v39 = vmax.f32 %v2304_v42, 0.0  ;;  %v2307_v29 = vadd.f32 %v2878_v49, %v4584_v12 }
 0x56a   :  { %v2215_v45 = vpop.f32.mrf.mxu1 }
 0x56b   :  { %2369 = vst.msk [vmem:[%s4749_s3 + $0x80] sm:$0xff] %vm2352_vm1, %v2336_v39  ;;  %v2339_v28 = vmax.f32 %v2307_v29, 0.0  ;;  %v2306_v37 = vadd.f32 %v4584_v12, %v2215_v45 }
 0x56c   :  { %v2881_v27 = vpop.f32.mrf.mxu1 }
 0x56d   :  { %2372 = vst.msk [vmem:[%s4749_s3 + $0x98] sm:$0xff] %vm2352_vm1, %v2339_v28  ;;  %v2338_v34 = vmax.f32 %v2306_v37, 0.0  ;;  %v2309_v54 = vadd.f32 %v2881_v27, %v4584_v12 }
 0x56e   :  { %v2225_v58 = vpop.f32.mrf.mxu1 }
 0x56f   :  { %2371 = vst.msk [vmem:[%s4749_s3 + $0x90] sm:$0xff] %vm2352_vm1, %v2338_v34  ;;  %v2341_v13 = vmax.f32 %v2309_v54, 0.0  ;;  %v2308_v62 = vadd.f32 %v4584_v12, %v2225_v58 }
 0x570   :  { %v2884_v50 = vpop.f32.mrf.mxu1 }
 0x571   :  { %2374 = vst.msk [vmem:[%s4749_s3 + $0xa8] sm:$0xff] %vm2352_vm1, %v2341_v13  ;;  %v2340_v2 = vmax.f32 %v2308_v62, 0.0  ;;  %v2311_v44 = vadd.f32 %v2884_v50, %v4584_v12 }
 0x572   :  { %v2235_v46 = vpop.f32.mrf.mxu1 }
 0x573   :  { %2373 = vst.msk [vmem:[%s4749_s3 + $0xa0] sm:$0xff] %vm2352_vm1, %v2340_v2  ;;  %v2343_v47 = vmax.f32 %v2311_v44, 0.0  ;;  %v2310_v14 = vadd.f32 %v4584_v12, %v2235_v46 }
 0x574   :  { %v2887_v19 = vpop.f32.mrf.mxu1 }
 0x575   :  { %2376 = vst.msk [vmem:[%s4749_s3 + $0xb8] sm:$0xff] %vm2352_vm1, %v2343_v47  ;;  %v2342_v35 = vmax.f32 %v2310_v14, 0.0  ;;  %v2313_v6 = vadd.f32 %v2887_v19, %v4584_v12 }
 0x576   :  { %v2245_v22 = vpop.f32.mrf.mxu1 }
 0x577   :  { %2375 = vst.msk [vmem:[%s4749_s3 + $0xb0] sm:$0xff] %vm2352_vm1, %v2342_v35  ;;  %v2345_v1 = vmax.f32 %v2313_v6, 0.0  ;;  %v2312_v63 = vadd.f32 %v4584_v12, %v2245_v22 }
 0x578   :  { %v2890_v4 = vpop.f32.mrf.mxu1 }
 0x579   :  { %2378 = vst.msk [vmem:[%s4749_s3 + $0xc8] sm:$0xff] %vm2352_vm1, %v2345_v1  ;;  %v2344_v57 = vmax.f32 %v2312_v63, 0.0  ;;  %v2315_v26 = vadd.f32 %v2890_v4, %v4584_v12 }
 0x57a   :  { %v2255_v18 = vpop.f32.mrf.mxu1 }
 0x57b   :  { %2377 = vst.msk [vmem:[%s4749_s3 + $0xc0] sm:$0xff] %vm2352_vm1, %v2344_v57  ;;  %v2347_v9 = vmax.f32 %v2315_v26, 0.0  ;;  %v2314_v16 = vadd.f32 %v4584_v12, %v2255_v18 }
 0x57c   :  { %v2893_v59 = vpop.f32.mrf.mxu1 }
 0x57d   :  { %2380 = vst.msk [vmem:[%s4749_s3 + $0xd8] sm:$0xff] %vm2352_vm1, %v2347_v9  ;;  %v2346_v3 = vmax.f32 %v2314_v16, 0.0  ;;  %v2317_v15 = vadd.f32 %v2893_v59, %v4584_v12 }
 0x57e   :  { %v2265_v60 = vpop.f32.mrf.mxu1 }
 0x57f   :  { %2379 = vst.msk [vmem:[%s4749_s3 + $0xd0] sm:$0xff] %vm2352_vm1, %v2346_v3  ;;  %v2349_v8 = vmax.f32 %v2317_v15, 0.0  ;;  %v2316_v21 = vadd.f32 %v4584_v12, %v2265_v60 }
 0x580   :  { %v2896_v24 = vpop.f32.mrf.mxu1 }
 0x581   :  { %2382 = vst.msk [vmem:[%s4749_s3 + $0xe8] sm:$0xff] %vm2352_vm1, %v2349_v8  ;;  %v2348_v17 = vmax.f32 %v2316_v21, 0.0  ;;  %v2319_v30 = vadd.f32 %v2896_v24, %v4584_v12 }
 0x582   :  { %v2275_v53 = vpop.f32.mrf.mxu1 }
 0x583   :  { %2381 = vst.msk [vmem:[%s4749_s3 + $0xe0] sm:$0xff] %vm2352_vm1, %v2348_v17  ;;  %v2351_v36 = vmax.f32 %v2319_v30, 0.0  ;;  %v2318_v40 = vadd.f32 %v4584_v12, %v2275_v53 }
 0x585   :  { %2384 = vst.msk [vmem:[%s4749_s3 + $0xf8] sm:$0xff] %vm2352_vm1, %v2351_v36  ;;  %v2350_v33 = vmax.f32 %v2318_v40, 0.0 }
 0x587   :  { %2383 = vst.msk [vmem:[%s4749_s3 + $0xf0] sm:$0xff] %vm2352_vm1, %v2350_v33 }

</bundles_post_ra>
